<compile_context>
chip_gen: v7x
topology: tpu7x:2x2x1
jax: 0.10.0
libtpu: 0.0.40
codegen_flags: <defaults>
</compile_context>

<pallas_src>
import functools

import jax
import jax.numpy as jnp
from jax.experimental import pallas as pl
from jax.experimental.pallas import tpu as pltpu

EPS = 1e-5


# ---------------------------------------------------------------------------
# Pass 1: LayerNorm + ReLU + fused SAGEConv linears  (h @ [W_l | W_r])
# ---------------------------------------------------------------------------
def prepass_kernel(x_ref, gamma_ref, beta_ref, w_ref, bl_ref, z_ref, r_ref, *,
                   c_out):
    x = x_ref[...].astype(jnp.float32)                         # (TILE, Cin)
    mean = jnp.mean(x, axis=-1, keepdims=True)
    var = jnp.mean((x - mean) ** 2, axis=-1, keepdims=True)
    h = (x - mean) * jax.lax.rsqrt(var + EPS)
    h = h * gamma_ref[...] + beta_ref[...]
    h = jnp.maximum(h, 0.0).astype(jnp.bfloat16)               # bf16 MXU operand
    # One fused bf16 matmul: (TILE, Cin) @ (Cin, 2*Cout) -> f32
    hw = jnp.dot(h, w_ref[...], preferred_element_type=jnp.float32)
    z_ref[...] = hw[:, :c_out].astype(z_ref.dtype)             # neighbor path
    r_ref[...] = hw[:, c_out:] + bl_ref[...]                   # root path + bias


# ---------------------------------------------------------------------------
# Pass 2: mean aggregation = (counts @ z) * (1/deg) + r
#   counts: int8 in HBM, cast to bf16 in kernel; compute + DMA elided for
#   all-zero adjacency tiles via the compacted (nnz, kmap) SMEM tables.
# ---------------------------------------------------------------------------
def make_aggregate_kernel(tile_k, g_k, z_resident):
    def aggregate_kernel(nnz_ref, kmap_ref, adj_ref, z_ref, invdeg_ref, r_ref,
                         out_ref):
        i = pl.program_id(0)
        k = pl.program_id(1)

        @pl.when(k == 0)
        def _():
            out_ref[...] = jnp.zeros_like(out_ref)

        # Only the first nnz[i] k-steps carry new (nonzero) adjacency tiles;
        # later steps reuse the previous block index, so their DMA is elided.
        @pl.when(k < nnz_ref[i])
        def _():
            adj = adj_ref[...].astype(jnp.bfloat16)            # int8 -> bf16 (exact)
            if z_resident:
                kk = kmap_ref[i * g_k + k]
                off = pl.multiple_of(kk * tile_k, tile_k)
                zt = z_ref[pl.ds(off, tile_k), :]
            else:
                zt = z_ref[...]
            out_ref[...] += jnp.dot(adj, zt,
                                    preferred_element_type=jnp.float32)

        @pl.when(k == pl.num_programs(1) - 1)
        def _():
            out_ref[...] = out_ref[...] * invdeg_ref[...] + r_ref[...]

    return aggregate_kernel


# ---------------------------------------------------------------------------
# Wrapper
# ---------------------------------------------------------------------------
def gnn_block_pallas(x, gamma, beta, edge_index, w_l, b_l, w_r, *,
                     tile_k=256, z_resident_budget=16 * 1024 * 1024):
    """x: (N, Cin); edge_index: (2, E) [src; dst]; w_l, w_r: (Cin, Cout); b_l: (1, Cout)."""
    N, Cin = x.shape
    Cout = w_l.shape[1]
    assert Cin % 128 == 0 and Cout % 128 == 0, "pad channels to multiples of 128"
    assert tile_k % 256 == 0

    # ---- plain-JAX glue: integer edge counts, degrees ----
    src, dst = edge_index[0], edge_index[1]
    counts = jnp.zeros((N, N), jnp.float32).at[dst, src].add(1.0)
    deg = jnp.sum(counts, axis=1, keepdims=True)
    inv_deg = 1.0 / jnp.maximum(deg, 1.0)                      # (N, 1) f32

    n_pad = pl.cdiv(N, tile_k) * tile_k
    pad = n_pad - N
    x_p = jnp.pad(x, ((0, pad), (0, 0)))
    counts_p = jnp.pad(counts, ((0, pad), (0, pad)))
    inv_deg_p = jnp.pad(inv_deg, ((0, pad), (0, 0)), constant_values=1.0)

    # int8 counts: halves the dominant HBM stream (edge multiplicity must be <= 127).
    counts_i8 = counts_p.astype(jnp.int8)

    # Row tile: as large as reasonable, but keep >= 2 row tiles when possible
    # so v7x's two TensorCores stay balanced.
    tile_m = n_pad
    for t in (512, 256, 128):
        if n_pad % t == 0 and n_pad // t >= 2:
            tile_m = t
            break
    g_m = n_pad // tile_m
    g_k = n_pad // tile_k

    # ---- compacted nonzero-tile tables (scalar prefetch) ----
    tile_nnz = (counts_p.reshape(g_m, tile_m, g_k, tile_k).sum(axis=(1, 3)) > 0)
    nnz = tile_nnz.sum(axis=1).astype(jnp.int32)               # (g_m,)
    # unique sort keys: nonzero tiles first (ascending k), zero tiles after
    keys = jnp.where(tile_nnz, 0, g_k) + jnp.arange(g_k)[None, :]
    order = jnp.argsort(keys, axis=1)
    # clamp positions >= nnz[i] to the last nonzero -> same block index -> DMA elided
    pos = jnp.minimum(jnp.arange(g_k)[None, :], jnp.maximum(nnz - 1, 0)[:, None])
    kmap = jnp.take_along_axis(order, pos, axis=1).astype(jnp.int32)
    kmap_flat = kmap.reshape(-1)                               # 1-D: cheap SMEM layout

    # ---- Pass 1: z = h @ W_l (bf16),  r = h @ W_r + b_l (f32), fused weights ----
    w_cat = jnp.concatenate([w_l, w_r], axis=1).astype(jnp.bfloat16)   # (Cin, 2*Cout)
    z, r = pl.pallas_call(
        functools.partial(prepass_kernel, c_out=Cout),
        out_shape=(jax.ShapeDtypeStruct((n_pad, Cout), jnp.bfloat16),
                   jax.ShapeDtypeStruct((n_pad, Cout), jnp.float32)),
        grid=(g_m,),
        in_specs=[
            pl.BlockSpec((tile_m, Cin), lambda i: (i, 0)),     # x rows
            pl.BlockSpec((1, Cin), lambda i: (0, 0)),          # gamma
            pl.BlockSpec((1, Cin), lambda i: (0, 0)),          # beta
            pl.BlockSpec((Cin, 2 * Cout), lambda i: (0, 0)),   # [W_l | W_r] bf16
            pl.BlockSpec((1, Cout), lambda i: (0, 0)),         # b_l
        ],
        out_specs=(pl.BlockSpec((tile_m, Cout), lambda i: (i, 0)),
                   pl.BlockSpec((tile_m, Cout), lambda i: (i, 0))),
        compiler_params=pltpu.CompilerParams(dimension_semantics=("parallel",)),
    )(x_p, gamma, beta, w_cat, b_l)

    # ---- Pass 2: tiled aggregation matmul with DMA-elided zero tiles ----
    z_bytes = n_pad * Cout * 2
    z_resident = z_bytes <= z_resident_budget                  # v7x-safe budget
    if z_resident:
        # whole z fetched once (constant block index across the grid)
        z_spec = pl.BlockSpec((n_pad, Cout), lambda i, k, nnz_r, kmap_r: (0, 0))
    else:
        z_spec = pl.BlockSpec(
            (tile_k, Cout),
            lambda i, k, nnz_r, kmap_r: (kmap_r[i * g_k + k], 0))

    adj_spec = pl.BlockSpec(
        (tile_m, tile_k),
        lambda i, k, nnz_r, kmap_r: (i, kmap_r[i * g_k + k]))

    out = pl.pallas_call(
        make_aggregate_kernel(tile_k, g_k, z_resident),
        out_shape=jax.ShapeDtypeStruct((n_pad, Cout), jnp.float32),
        grid_spec=pltpu.PrefetchScalarGridSpec(
            num_scalar_prefetch=2,                             # nnz, kmap -> SMEM
            grid=(g_m, g_k),
            in_specs=[
                adj_spec,                                      # int8 counts
                z_spec,                                        # bf16 z
                pl.BlockSpec((tile_m, 1), lambda i, k, nnz_r, kmap_r: (i, 0)),
                pl.BlockSpec((tile_m, Cout), lambda i, k, nnz_r, kmap_r: (i, 0)),
            ],
            out_specs=pl.BlockSpec((tile_m, Cout),
                                   lambda i, k, nnz_r, kmap_r: (i, 0)),
        ),
        compiler_params=pltpu.CompilerParams(
            dimension_semantics=("parallel", "arbitrary"),
            vmem_limit_bytes=32 * 1024 * 1024),
    )(nnz, kmap_flat, counts_i8, z, inv_deg_p, r)

    return out[:N]


# ---------------------------------------------------------------------------
# Pure-JAX reference (module semantics)
# ---------------------------------------------------------------------------
def reference_forward(x, gamma, beta, edge_index, w_l, b_l, w_r):
    N = x.shape[0]
    x = x.astype(jnp.float32)
    mean = jnp.mean(x, axis=-1, keepdims=True)
    var = jnp.mean((x - mean) ** 2, axis=-1, keepdims=True)
    h = (x - mean) * jax.lax.rsqrt(var + EPS) * gamma + beta
    h = jnp.maximum(h, 0.0)
    src, dst = edge_index[0], edge_index[1]
    adj = jnp.zeros((N, N), jnp.float32).at[dst, src].add(1.0)
    deg = jnp.clip(jnp.sum(adj, axis=1, keepdims=True), 1.0, None)
    adj_mean = adj / deg
    return (adj_mean @ h) @ w_l + b_l + h @ w_r


if __name__ == "__main__":
    N = 512          # number of graph nodes
    E = 4096         # number of directed edges
    C_IN = 128       # in_channels  (lane-dense)
    C_OUT = 128      # out_channels (lane-dense)

    key = jax.random.PRNGKey(0)
    kx, ke1, ke2, kwl, kwr = jax.random.split(key, 5)

    x = jax.random.normal(kx, (N, C_IN), jnp.float32)
    src = jax.random.randint(ke1, (E,), 0, N)
    dst = jax.random.randint(ke2, (E,), 0, N)
    edge_index = jnp.stack([src, dst], axis=0)                # (2, E), PyG convention

    # LayerNorm params (reset_parameters -> ones / zeros)
    gamma = jnp.ones((1, C_IN), jnp.float32)
    beta = jnp.zeros((1, C_IN), jnp.float32)

    # SAGEConv params: lin_l (with bias) on aggregated neighbors, lin_r on root.
    w_l = jax.random.normal(kwl, (C_IN, C_OUT), jnp.float32) * 0.1
    w_r = jax.random.normal(kwr, (C_IN, C_OUT), jnp.float32) * 0.1
    b_l = jnp.zeros((1, C_OUT), jnp.float32)

    out = gnn_block_pallas(x, gamma, beta, edge_index, w_l, b_l, w_r)
    out = jax.block_until_ready(out)

    ref = reference_forward(x, gamma, beta, edge_index, w_l, b_l, w_r)
    assert out.shape == (N, C_OUT)
    max_err = jnp.max(jnp.abs(out - ref))
    # bf16 MXU operands (h, W, z) with f32 accumulation -> small, bounded error.
    assert jnp.allclose(out, ref, atol=3e-2, rtol=3e-2), f"max abs err={max_err}"

    print("KERNEL_OK")
</pallas_src>

<mosaic_0001>
module attributes {stable_mosaic.version = 11 : i64} {
  func.func @prepass_kernel(%arg0: i32, %arg1: memref<256x128xf32, #tpu.memory_space<vmem>>, %arg2: memref<1x128xf32, #tpu.memory_space<vmem>>, %arg3: memref<1x128xf32, #tpu.memory_space<vmem>>, %arg4: memref<128x256xbf16, #tpu.memory_space<vmem>>, %arg5: memref<1x128xf32, #tpu.memory_space<vmem>>, %arg6: memref<256x128xbf16, #tpu.memory_space<vmem>>, %arg7: memref<256x128xf32, #tpu.memory_space<vmem>>) attributes {dimension_semantics = [#tpu.dimension_semantics<parallel>], iteration_bounds = array<i64: 2>, scalar_prefetch = 0 : i64, scratch_operands = 0 : i64, tpu.core_type = #tpu.core_type<tc>, window_params = [{transform_indices = @transform_0, window_bounds = array<i64: 256, 128>}, {pipeline_mode = #tpu.pipeline_mode<synchronous>, transform_indices = @transform_1, window_bounds = array<i64: 1, 128>}, {pipeline_mode = #tpu.pipeline_mode<synchronous>, transform_indices = @transform_2, window_bounds = array<i64: 1, 128>}, {pipeline_mode = #tpu.pipeline_mode<synchronous>, transform_indices = @transform_3, window_bounds = array<i64: 128, 256>}, {pipeline_mode = #tpu.pipeline_mode<synchronous>, transform_indices = @transform_4, window_bounds = array<i64: 1, 128>}, {transform_indices = @transform_5, window_bounds = array<i64: 256, 128>}, {transform_indices = @transform_6, window_bounds = array<i64: 256, 128>}]} {
    %c0 = arith.constant 0 : index
    %c0_0 = arith.constant 0 : index
    %0 = vector.load %arg1[%c0, %c0_0] : memref<256x128xf32, #tpu.memory_space<vmem>>, vector<256x128xf32>
    %cst = arith.constant dense<0.000000e+00> : vector<256xf32>
    %1 = vector.multi_reduction <add>, %0, %cst [1] : vector<256x128xf32> to vector<256xf32>
    %2 = vector.shape_cast %1 : vector<256xf32> to vector<256x1xf32>
    %cst_1 = arith.constant 1.280000e+02 : f32
    %3 = vector.broadcast %cst_1 : f32 to vector<256x1xf32>
    %4 = arith.divf %2, %3 : vector<256x1xf32>
    %5 = vector.broadcast %4 : vector<256x1xf32> to vector<256x128xf32>
    %6 = arith.subf %0, %5 : vector<256x128xf32>
    %7 = arith.mulf %6, %6 : vector<256x128xf32>
    %cst_2 = arith.constant dense<0.000000e+00> : vector<256xf32>
    %8 = vector.multi_reduction <add>, %7, %cst_2 [1] : vector<256x128xf32> to vector<256xf32>
    %9 = vector.shape_cast %8 : vector<256xf32> to vector<256x1xf32>
    %cst_3 = arith.constant 1.280000e+02 : f32
    %10 = vector.broadcast %cst_3 : f32 to vector<256x1xf32>
    %11 = arith.divf %9, %10 : vector<256x1xf32>
    %12 = vector.broadcast %4 : vector<256x1xf32> to vector<256x128xf32>
    %13 = arith.subf %0, %12 : vector<256x128xf32>
    %cst_4 = arith.constant 9.99999974E-6 : f32
    %14 = vector.broadcast %cst_4 : f32 to vector<256x1xf32>
    %15 = arith.addf %11, %14 : vector<256x1xf32>
    %16 = math.rsqrt %15 : vector<256x1xf32>
    %17 = vector.broadcast %16 : vector<256x1xf32> to vector<256x128xf32>
    %18 = arith.mulf %13, %17 : vector<256x128xf32>
    %c0_5 = arith.constant 0 : index
    %c0_6 = arith.constant 0 : index
    %19 = vector.load %arg2[%c0_5, %c0_6] : memref<1x128xf32, #tpu.memory_space<vmem>>, vector<1x128xf32>
    %20 = vector.broadcast %19 : vector<1x128xf32> to vector<256x128xf32>
    %21 = arith.mulf %18, %20 : vector<256x128xf32>
    %c0_7 = arith.constant 0 : index
    %c0_8 = arith.constant 0 : index
    %22 = vector.load %arg3[%c0_7, %c0_8] : memref<1x128xf32, #tpu.memory_space<vmem>>, vector<1x128xf32>
    %23 = vector.broadcast %22 : vector<1x128xf32> to vector<256x128xf32>
    %24 = arith.addf %21, %23 : vector<256x128xf32>
    %cst_9 = arith.constant 0.000000e+00 : f32
    %25 = vector.broadcast %cst_9 : f32 to vector<256x128xf32>
    %26 = arith.maximumf %24, %25 : vector<256x128xf32>
    %27 = arith.truncf %26 : vector<256x128xf32> to vector<256x128xbf16>
    %c0_10 = arith.constant 0 : index
    %c0_11 = arith.constant 0 : index
    %28 = vector.load %arg4[%c0_10, %c0_11] : memref<128x256xbf16, #tpu.memory_space<vmem>>, vector<128x256xbf16>
    %cst_12 = arith.constant dense<0.000000e+00> : vector<256x256xf32>
    %29 = tpu.matmul %27, %28, %cst_12 {dimension_numbers = #tpu.dot_dimension_numbers<[1], [0], [0], [1], [0, 0, 1, 1], [], []>} : vector<256x128xbf16>, vector<128x256xbf16>, vector<256x256xf32> -> vector<256x256xf32>
    %30 = vector.extract_strided_slice %29 {offsets = [0, 0], sizes = [256, 128], strides = [1, 1]} : vector<256x256xf32> to vector<256x128xf32>
    %31 = arith.truncf %30 : vector<256x128xf32> to vector<256x128xbf16>
    %c0_13 = arith.constant 0 : index
    %c0_14 = arith.constant 0 : index
    %32 = vector.load %arg6[%c0_13, %c0_14] : memref<256x128xbf16, #tpu.memory_space<vmem>>, vector<256x128xbf16>
    tpu.vector_store %arg6[%c0_13, %c0_14], %31 {strides = array<i32>} : memref<256x128xbf16, #tpu.memory_space<vmem>>, vector<256x128xbf16>,
    %33 = vector.extract_strided_slice %29 {offsets = [0, 128], sizes = [256, 128], strides = [1, 1]} : vector<256x256xf32> to vector<256x128xf32>
    %c0_15 = arith.constant 0 : index
    %c0_16 = arith.constant 0 : index
    %34 = vector.load %arg5[%c0_15, %c0_16] : memref<1x128xf32, #tpu.memory_space<vmem>>, vector<1x128xf32>
    %35 = vector.broadcast %34 : vector<1x128xf32> to vector<256x128xf32>
    %36 = arith.addf %33, %35 : vector<256x128xf32>
    %c0_17 = arith.constant 0 : index
    %c0_18 = arith.constant 0 : index
    %37 = vector.load %arg7[%c0_17, %c0_18] : memref<256x128xf32, #tpu.memory_space<vmem>>, vector<256x128xf32>
    tpu.vector_store %arg7[%c0_17, %c0_18], %36 {strides = array<i32>} : memref<256x128xf32, #tpu.memory_space<vmem>>, vector<256x128xf32>,
    return
  }
  func.func @transform_0(%arg0: i32) -> (i32, i32) {
    %c0_i32 = arith.constant 0 : i32
    %c0_i32_0 = arith.constant 0 : i32
    return %arg0, %c0_i32 : i32, i32
  }
  func.func @transform_1(%arg0: i32) -> (i32, i32) {
    %c0_i32 = arith.constant 0 : i32
    %c0_i32_0 = arith.constant 0 : i32
    %c0_i32_1 = arith.constant 0 : i32
    return %c0_i32, %c0_i32_0 : i32, i32
  }
  func.func @transform_2(%arg0: i32) -> (i32, i32) {
    %c0_i32 = arith.constant 0 : i32
    %c0_i32_0 = arith.constant 0 : i32
    %c0_i32_1 = arith.constant 0 : i32
    return %c0_i32, %c0_i32_0 : i32, i32
  }
  func.func @transform_3(%arg0: i32) -> (i32, i32) {
    %c0_i32 = arith.constant 0 : i32
    %c0_i32_0 = arith.constant 0 : i32
    %c0_i32_1 = arith.constant 0 : i32
    return %c0_i32, %c0_i32_0 : i32, i32
  }
  func.func @transform_4(%arg0: i32) -> (i32, i32) {
    %c0_i32 = arith.constant 0 : i32
    %c0_i32_0 = arith.constant 0 : i32
    %c0_i32_1 = arith.constant 0 : i32
    return %c0_i32, %c0_i32_0 : i32, i32
  }
  func.func @transform_5(%arg0: i32) -> (i32, i32) {
    %c0_i32 = arith.constant 0 : i32
    %c0_i32_0 = arith.constant 0 : i32
    return %arg0, %c0_i32 : i32, i32
  }
  func.func @transform_6(%arg0: i32) -> (i32, i32) {
    %c0_i32 = arith.constant 0 : i32
    %c0_i32_0 = arith.constant 0 : i32
    return %arg0, %c0_i32 : i32, i32
  }
}

</mosaic_0001>

<bundles_post_ra>
// kernel: tpu_custom_call.1
= control target key start
LH: loop header
LB: loop body
LE: loop exit
PB: predicated region body
PF: predicated region fallthrough
CT: control target
= control target key end

     0   :  { %12 = vsyncpa [#allocation3], 0  ;;  %s2810_s0 = inlined_call_operand.hbm [shape: f32[512,128], index: 0, kind: input, shape index: {}]   ;;  %s2811_s1 = inlined_call_operand.vmem [shape: f32[1,128], index: 1, kind: input, shape index: {}]   ;;  %s2812_s2 = inlined_call_operand.vmem [shape: f32[1,128], index: 2, kind: input, shape index: {}]   ;;  %s2813_s3 = inlined_call_operand.hbm [shape: bf16[128,256], index: 3, kind: input, shape index: {}]   ;;  %s2814_s4 = inlined_call_operand.vmem [shape: f32[1,128], index: 4, kind: input, shape index: {}]   ;;  %s2815_s5 = inlined_call_operand.hbm [shape: bf16[512,128], index: 5, kind: output, shape index: {0}]   ;;  %s2816_s6 = inlined_call_operand.hbm [shape: f32[512,128], index: 6, kind: output, shape index: {1}]  }
   0x1   :  { %14 = vsyncpa [#allocation3 + $0x1], 0 }
   0x2   :  { %15 = vsyncpa [#allocation6], 0 }
   0x3   :  { %16 = vsyncpa [#allocation4], 0 }
   0x4   :  { %18 = vsyncpa [#allocation4 + $0x1], 0 }
   0x5   :  { %19 = vsyncpa [#allocation9], 0 }
   0x6   :  { %21 = vsyncpa [#allocation9 + $0x1], 0  ;;  %s2063_s21 = smov 0   ;;  %s2065_s22 = smov 0  }
   0x7   :  { %s2067_s23 = smov 0   ;;  %s2069_s24 = smov 0  }
   0x8 LB: > { %s2084_s25 = sadd.s32 4294967295, %s2015_s24   ;;  %s1481_s26 = sadd.s32 4294967294, %s2015_s24   ;;  %s2015_s24 = sphi %s2069_s24, %s2836_s24   ;;  %s2011_s23 = sphi %s2067_s23, %s2835_s23   ;;  %s2007_s22 = sphi %s2065_s22, %s2834_s22   ;;  %s2003_s21 = sphi %s2063_s21, %s2833_s21  }
   0x9   : > { %p47_p0 = scmp.ne.s32.totalorder %s2007_s22, %s2003_s21  ;;  %p2817_p1 = scmp.eq.s32.totalorder %s2084_s25, 0 }
   0xa   : > { %p161_p3 = scmp.eq.s32.totalorder %s1481_s26, 1  ;;  %p1482_p5 = scmp.ge.s32.totalorder %s2015_s24, 1 }
   0xb   : > { %p2093_p4 = por %p2817_p1, %p47_p0  ;;  %p194_p7 = scmp.lt.s32.totalorder %s2015_s24, 3 }
   0xc   : > { %p2098_p6 = por %p161_p3, %p47_p0  ;;  %s2017_s30 = smov [#allocation5]  }
   0xd   : > { %s2820_s27 = scalar_select %p2093_p4, 1, 0 }
   0xe   : > { %s2821_s28 = scalar_select %p2098_p6, 1, 0 }
   0xf   : > { %p2103_p8 = pnand %p1482_p5, %p194_p7  ;;  %s212_s7 = sshll.u32 %s2017_s30, 4  ;;  %s2107_s7 = int_to_ptr.vmem [resolvable:$true] %s212_s7 }
  0x10   : > { %s2119_s9 = sadd.s32 1, %s2015_s24   ;;  %s34_s10 = sadd.s32 1, %s2011_s23 }
  0x11   : > { %s2822_s29 = scalar_select %p2103_p8, 1, 0 }
  0x12   : > { %p1708_p9 = pneg %p2103_p8  ;;  %s31_s11 = ssub.s32 %s2015_s24, %s2119_s9 }
  0x13   : > { %s1855_s14 = scalar_lea.hbm %s2813_s3, 2048 }
  0x14   : > { %p2114_p11 = pnand %p1708_p9, %p2817_p1  ;;  %p1856_p12 = scmp.ne.s32.totalorder %s2813_s3, %s1855_s14 }
  0x15   : > { %p1862_p5 = scmp.lt.u32.totalorder %s1855_s14, %s2813_s3 }
  0x16   : > { %p1857_p13 = pneg %p2114_p11 }
  0x18   : > { %p1858_p0 = pnand %p1857_p13, %p1856_p12 }
  0x1a   : > { %p1859_p3 = pneg %p1858_p0 }
  0x1c   : > { %p1864_p7 = pnand %p1862_p5, %p1859_p3 }
  0x1e   : > { %1867 = shalt.err (!%p1864_p7)
}
  0x1f   : > { %s1868_s19 = scalar_lea.vmem %s2107_s7, 2048  ;;  %p1876_p2 = scmp.lt.s32.totalorder %s2107_s7, %s2107_s7 }
  0x20   : > { %p1869_p9 = scmp.ne.s32.totalorder %s2107_s7, %s1868_s19  ;;  %p1877_p6 = scmp.lt.s32.totalorder %s1868_s19, %s1868_s19 }
  0x22   : > { %p1871_p10 = pnand %p1869_p9, %p1857_p13  ;;  %p1878_p4 = por %p1877_p6, %p1876_p2 }
  0x24   : > { %p1872_p1 = pneg %p1871_p10 }
  0x26   : > { %p1879_p8 = pnand %p1878_p4, %p1872_p1 }
  0x28   : > { %1882 = shalt.err (!%p1879_p8)
}
  0x29   : > { %s2018_s20 = smov 128   ;;  %s2019_s26 = smov 8  }
  0x2a   : > { %1711 = dma.hbm_to_vmem [thread:$0]  (!%p2114_p11), %s2813_s3, 2048, %s2107_s7, [#allocation6], %s2018_s20, %s2018_s20, %s2019_s26  }
  0x2b   : > { %p32_p1 = scmp.eq.s32.totalorder %s31_s11, 0  ;;  %p41_p2 = scmp.ne.s32.totalorder %s2011_s23, %s2007_s22 }
  0x2c   : > { %p42_p4 = scmp.eq.s32.totalorder %s2015_s24, 0  ;;  %p1724_p6 = scmp.lt.s32.totalorder %s2015_s24, 2 }
  0x2d   : > { %s2153_s13 = scalar_select %p32_p1, %s2011_s23, %s34_s10  }
  0x2e   : > { %p43_p8 = por %p42_p4, %p41_p2  ;;  %p2824_p10 = scmp.eq.s32.totalorder %s2084_s25, 1 }
  0x2f   : > { %s229_s8 = sand.u32 1, %s2011_s23   ;;  %s1552_s15 = sshll.u32 %s2015_s24, 12 }
  0x30   : > { %p2157_p12 = por %p2824_p10, %p41_p2  ;;  %s1485_s16 = sshll.u32 %s229_s8, 8 }
  0x31   : > { %s2166_s19 = scalar_lea.hbm %s2810_s0, %s1552_s15  ;;  %s233_s7 = scalar_lea.vmem [#allocation2], %s1485_s16 }
  0x32   : > { %s240_s10 = sshll.u32 %s233_s7, 4  ;;  %p2168_p11 = pnand %p1724_p6, %p43_p8  ;;  %s2172_s10 = int_to_ptr.vmem [resolvable:$true] %s240_s10 }
  0x33   : > { %s2174_s30 = scalar_lea.sflag [#allocation3], %s229_s8  ;;  %s1883_s12 = scalar_lea.hbm %s2166_s19, 4096 }
  0x34   : > { %p1884_p13 = scmp.ne.s32.totalorder %s2166_s19, %s1883_s12  ;;  %p1885_p0 = pneg %p2168_p11 }
  0x35   : > { %s1888_s17 = scalar_lea.hbm %s2810_s0, 8192  ;;  %p1889_p7 = scmp.lt.u32.totalorder %s2166_s19, %s2810_s0 }
  0x36   : > { %p1886_p3 = pnand %p1885_p0, %p1884_p13  ;;  %p1890_p9 = scmp.lt.u32.totalorder %s1888_s17, %s1883_s12 }
  0x37   : > { %p1892_p2 = scmp.lt.u32.totalorder %s1883_s12, %s2166_s19 }
  0x38   : > { %p1887_p5 = pneg %p1886_p3  ;;  %p1891_p1 = por %p1890_p9, %p1889_p7 }
  0x3a   : > { %p1893_p4 = por %p1892_p2, %p1891_p1 }
  0x3c   : > { %p1894_p6 = pnand %p1893_p4, %p1887_p5 }
  0x3e   : > { %1897 = shalt.err (!%p1894_p6)
}
  0x3f   : > { %s1898_s8 = scalar_lea.vmem %s2172_s10, 4096  ;;  %s2020_s15 = smov [#allocation2]  }
  0x40   : > { %p1899_p8 = scmp.ne.s32.totalorder %s2172_s10, %s1898_s8  ;;  %s1903_s16 = sshll.u32 %s2020_s15, 4  ;;  %s1904_s16 = int_to_ptr.vmem [resolvable:$false] %s1903_s16 }
  0x41   : > { %s1905_s18 = scalar_lea.vmem %s1904_s16, 8192  ;;  %p1906_p3 = scmp.lt.s32.totalorder %s2172_s10, %s1904_s16 }
  0x42   : > { %p1901_p10 = pnand %p1899_p8, %p1885_p0  ;;  %p1907_p7 = scmp.lt.s32.totalorder %s1905_s18, %s1898_s8 }
  0x44   : > { %p1902_p13 = pneg %p1901_p10  ;;  %p1908_p9 = por %p1907_p7, %p1906_p3 }
  0x46   : > { %p1909_p1 = pnand %p1908_p9, %p1902_p13 }
  0x48   : > { %1912 = shalt.err (!%p1909_p1)
}
  0x49   : > { %1715 = dma.hbm_to_vmem [thread:$0]  (!%p2168_p11), %s2166_s19, 4096, %s2172_s10, %s2174_s30, %s2018_s20, %s2018_s20, %s2019_s26  }
  0x4a   : > { %p2827_p0 = scmp.ne.s32.totalorder %s2822_s29, 0 }
  0x4b   : > { %s2208_s12 = sand.u32 (!%p2827_p0), 1, %s2007_s22   ;;  %p2828_p5 = scmp.ne.s32.totalorder (!%p2827_p0), %s2820_s27, 0 }
  0x4c   : > { %252 = sbr.rel (%p2827_p0) target bundleno = 723 (0x2d3), region = 40  ;;  %s1489_s17 = sshll.u32 (!%p2827_p0), %s2208_s12, 8 }
  0x4d   : > { %s255_s7 = scalar_lea.sflag (!%p2827_p0), [#allocation3], %s2208_s12  ;;  %s2214_s11 = scalar_lea.vmem (!%p2827_p0), [#allocation2], %s1489_s17 }
  0x53   : > { %1986 = dma.done.wait (%p2828_p5), %s255_s7, 4096  }
  0x54   : > { %1988 = vsyncadd (%p2828_p5), %s255_s7, 4294963200  ;;  %p2829_p11 = scmp.eq.s32.totalorder %s2084_s25, 0 }
  0x56   : > { %1990 = dma.done.wait (%p2829_p11), [#allocation6], 2048   ;;  %p2830_p2 = pmov %p2829_p11 }
  0x57   : > { %v2225_v0 = vld [vmem:[%s2214_s11] sm:$0xff]  ;;  %v2233_v2 = vld [vmem:[%s2214_s11 + $0x8] sm:$0xff]  ;;  %v2241_v4 = vld [vmem:[%s2214_s11 + $0x10] sm:$0xff]  ;;  %s1491_s30 = sshll.u32 %s2208_s12, 7  ;;  %s2643_s8 = scalar_lea.vmem [#allocation8], %s1489_s17 }
  0x58   : > { %1992 = vsyncadd (%p2830_p2), [#allocation6], 4294965248  ;;  %v2228_v1 = vld [vmem:[%s2214_s11 + $0x80] sm:$0xff]  ;;  %332 = vadd.xlane.f32.xlu0 %v2225_v0  ;;  %v2236_v3 = vld [vmem:[%s2214_s11 + $0x88] sm:$0xff]  ;;  %s2647_s15 = scalar_lea.vmem [#allocation7], %s1491_s30  ;;  %s1585_s16 = sshll.u32 %s2084_s25, 11 }
  0x59   : > { %364 = vadd.xlane.f32.xlu1 %v2228_v1  ;;  %v2244_v5 = vld [vmem:[%s2214_s11 + $0x18] sm:$0xff]  ;;  %v2249_v6 = vld [vmem:[%s2214_s11 + $0x90] sm:$0xff]  ;;  %v2255_v8 = vld [vmem:[%s2214_s11 + $0x20] sm:$0xff]  ;;  %s1350_s18 = sshll.u32 %s2647_s15, 4  ;;  %s1586_s27 = sshll.u32 %s2084_s25, 12  ;;  %s2729_s18 = int_to_ptr.vmem [resolvable:$true] %s1350_s18 }
  0x5a   : > { %v2252_v7 = vld [vmem:[%s2214_s11 + $0x98] sm:$0xff]  ;;  %v2258_v9 = vld [vmem:[%s2214_s11 + $0x28] sm:$0xff]  ;;  %v2265_v10 = vld [vmem:[%s2214_s11 + $0xa0] sm:$0xff]  ;;  %s1366_s29 = sshll.u32 %s2643_s8, 4  ;;  %s2736_s25 = scalar_lea.hbm %s2816_s6, %s1586_s27  ;;  %s2738_s29 = int_to_ptr.vmem [resolvable:$true] %s1366_s29 }
  0x5b   : > { %v2268_v11 = vld [vmem:[%s2214_s11 + $0xa8] sm:$0xff]  ;;  %v2273_v12 = vld [vmem:[%s2214_s11 + $0x30] sm:$0xff]  ;;  %v2276_v13 = vld [vmem:[%s2214_s11 + $0x38] sm:$0xff]  ;;  %s1332_s19 = scalar_lea.sflag [#allocation4], %s2208_s12  ;;  %s1913_s10 = scalar_lea.vmem %s2729_s18, 2048 }
  0x5c   : > { %334 = vadd.xlane.f32.xlu0 %v2233_v2  ;;  %v2281_v14 = vld [vmem:[%s2214_s11 + $0xb0] sm:$0xff]  ;;  %v2284_v15 = vld [vmem:[%s2214_s11 + $0xb8] sm:$0xff]  ;;  %v2289_v16 = vld [vmem:[%s2214_s11 + $0x40] sm:$0xff]  ;;  %p1914_p4 = scmp.ne.s32.totalorder %s2729_s18, %s1913_s10  ;;  %s2022_s30 = smov [#allocation7]  }
  0x5d   : > { %366 = vadd.xlane.f32.xlu1 %v2236_v3  ;;  %v2292_v17 = vld [vmem:[%s2214_s11 + $0x48] sm:$0xff]  ;;  %v2297_v18 = vld [vmem:[%s2214_s11 + $0xc0] sm:$0xff]  ;;  %v2305_v20 = vld [vmem:[%s2214_s11 + $0x50] sm:$0xff] }
  0x5e   : > { %v2300_v19 = vld [vmem:[%s2214_s11 + $0xc8] sm:$0xff]  ;;  %v2308_v21 = vld [vmem:[%s2214_s11 + $0x58] sm:$0xff]  ;;  %v2313_v22 = vld [vmem:[%s2214_s11 + $0xd0] sm:$0xff]  ;;  %p1915_p6 = pnand %p1914_p4, %p2157_p12 }
  0x5f   : > { %v2316_v23 = vld [vmem:[%s2214_s11 + $0xd8] sm:$0xff]  ;;  %v2321_v24 = vld [vmem:[%s2214_s11 + $0x60] sm:$0xff]  ;;  %v2324_v25 = vld [vmem:[%s2214_s11 + $0x68] sm:$0xff] }
  0x60   : > { %336 = vadd.xlane.f32.xlu0 %v2241_v4  ;;  %v2329_v26 = vld [vmem:[%s2214_s11 + $0xe0] sm:$0xff]  ;;  %v2332_v27 = vld [vmem:[%s2214_s11 + $0xe8] sm:$0xff]  ;;  %v2337_v28 = vld [vmem:[%s2214_s11 + $0x70] sm:$0xff]  ;;  %p1916_p8 = pneg %p1915_p6 }
  0x61   : > { %338 = vadd.xlane.f32.xlu1 %v2244_v5  ;;  %v2340_v29 = vld [vmem:[%s2214_s11 + $0x78] sm:$0xff]  ;;  %v2345_v30 = vld [vmem:[%s2214_s11 + $0xf0] sm:$0xff]  ;;  %v1767_v32 = vld [vmem:[#allocation5 + $0x4] ss:$8 sps:$4 sm:$0xff]  }
  0x62   : > { %v2348_v31 = vld [vmem:[%s2214_s11 + $0xf8] sm:$0xff]  ;;  %v1769_v33 = vld [vmem:[#allocation5] ss:$8 sps:$4 sm:$0xff]   ;;  %907 = vmatprep.subr.bf16.mxu0 %v1767_v32  ;;  %1682 = vmatprep.subr.bf16.mxu1 %v1767_v32  ;;  %s2722_s11 = scalar_lea.hbm %s2815_s5, %s1585_s16  ;;  %s1917_s16 = sshll.u32 %s2022_s30, 4  ;;  %s1918_s16 = int_to_ptr.vmem [resolvable:$false] %s1917_s16 }
  0x63   : > { %908 = vmatpush1.bf16.msra.mxu0 %v1769_v33  ;;  %1690 = vmatpush1.bf16.msra.mxu1 %v1769_v33  ;;  %s1919_s17 = scalar_lea.vmem %s1918_s16, 4096  ;;  %p1920_p10 = scmp.lt.s32.totalorder %s2729_s18, %s1918_s16 }
  0x64   : > { %368 = vadd.xlane.f32.xlu0 %v2249_v6  ;;  %p1921_p13 = scmp.lt.s32.totalorder %s1919_s17, %s1913_s10 }
  0x65   : > { %370 = vadd.xlane.f32.xlu1 %v2252_v7 }
  0x66   : > { %p1922_p3 = por %p1921_p13, %p1920_p10 }
  0x68   : > { %340 = vadd.xlane.f32.xlu0 %v2255_v8  ;;  %p1923_p7 = pnand %p1922_p3, %p1916_p8 }
  0x69   : > { %342 = vadd.xlane.f32.xlu1 %v2258_v9 }
  0x6c   : > { %372 = vadd.xlane.f32.xlu0 %v2265_v10 }
  0x6d   : > { %374 = vadd.xlane.f32.xlu1 %v2268_v11 }
  0x70   : > { %344 = vadd.xlane.f32.xlu0 %v2273_v12 }
  0x71   : > { %346 = vadd.xlane.f32.xlu1 %v2276_v13 }
  0x74   : > { %376 = vadd.xlane.f32.xlu0 %v2281_v14 }
  0x75   : > { %378 = vadd.xlane.f32.xlu1 %v2284_v15 }
  0x78   : > { %348 = vadd.xlane.f32.xlu0 %v2289_v16 }
  0x79   : > { %350 = vadd.xlane.f32.xlu1 %v2292_v17 }
  0x7c   : > { %380 = vadd.xlane.f32.xlu0 %v2297_v18 }
  0x7d   : > { %382 = vadd.xlane.f32.xlu1 %v2300_v19 }
  0x80   : > { %352 = vadd.xlane.f32.xlu0 %v2305_v20 }
  0x81   : > { %354 = vadd.xlane.f32.xlu1 %v2308_v21 }
  0x84   : > { %384 = vadd.xlane.f32.xlu0 %v2313_v22 }
  0x85   : > { %386 = vadd.xlane.f32.xlu1 %v2316_v23 }
  0x88   : > { %356 = vadd.xlane.f32.xlu0 %v2321_v24 }
  0x89   : > { %358 = vadd.xlane.f32.xlu1 %v2324_v25 }
  0x8c   : > { %388 = vadd.xlane.f32.xlu0 %v2329_v26 }
  0x8d   : > { %390 = vadd.xlane.f32.xlu1 %v2332_v27 }
  0x90   : > { %360 = vadd.xlane.f32.xlu0 %v2337_v28 }
  0x91   : > { %362 = vadd.xlane.f32.xlu1 %v2340_v29 }
  0x94   : > { %392 = vadd.xlane.f32.xlu0 %v2345_v30 }
  0x95   : > { %394 = vadd.xlane.f32.xlu1 %v2348_v31 }
  0xe5   : > { %v333_v34 = vpop.xlane.xlu0 %332 }
  0xe6   : > { %v365_v35 = vpop.xlane.xlu1 %364  ;;  %v397_v36 = vmul.f32 0.0078125, %v333_v34  ;;  %v1770_v34 = vld [vmem:[#allocation5 + $0x14] ss:$8 sps:$4 sm:$0xff]  }
  0xe7   : > { %v413_v37 = vmul.f32 0.0078125, %v365_v35  ;;  %909 = vmatprep.subr.bf16.mxu0 %v1770_v34  ;;  %1683 = vmatprep.subr.bf16.mxu1 %v1770_v34 }
  0xe8   : > { %v2353_v38 = vsub.f32 %v2225_v0, %v397_v36 }
  0xe9   : > { %v2356_v39 = vsub.f32 %v2228_v1, %v413_v37  ;;  %v335_v40 = vpop.xlane.xlu0 %334 }
  0xea   : > { %v367_v41 = vpop.xlane.xlu1 %366  ;;  %v398_v42 = vmul.f32 0.0078125, %v335_v40  ;;  %v461_v43 = vmul.f32 %v2353_v38, %v2353_v38  ;;  %v1772_v40 = vld [vmem:[#allocation5 + $0x10] ss:$8 sps:$4 sm:$0xff]  }
  0xeb   : > { %v414_v44 = vmul.f32 0.0078125, %v367_v41  ;;  %v477_v47 = vmul.f32 %v2356_v39, %v2356_v39  ;;  %910 = vmatpush1.bf16.msra.mxu0 %v1772_v40  ;;  %1691 = vmatpush1.bf16.msra.mxu1 %v1772_v40 }
  0xec   : > { %v2361_v45 = vsub.f32 %v2233_v2, %v398_v42  ;;  %493 = vadd.xlane.f32.xlu0 %v461_v43 }
  0xed   : > { %v2364_v46 = vsub.f32 %v2236_v3, %v414_v44  ;;  %v337_v48 = vpop.xlane.xlu0 %336 }
  0xee   : > { %v339_v49 = vpop.xlane.xlu1 %338  ;;  %v399_v50 = vmul.f32 0.0078125, %v337_v48  ;;  %v462_v51 = vmul.f32 %v2361_v45, %v2361_v45 }
  0xef   : > { %v400_v52 = vmul.f32 0.0078125, %v339_v49  ;;  %v478_v55 = vmul.f32 %v2364_v46, %v2364_v46  ;;  %v1773_v49 = vld [vmem:[#allocation5 + $0x24] ss:$8 sps:$4 sm:$0xff]  }
  0xf0   : > { %v2371_v53 = vsub.f32 %v2241_v4, %v399_v50  ;;  %525 = vadd.xlane.f32.xlu0 %v477_v47  ;;  %495 = vadd.xlane.f32.xlu1 %v462_v51 }
  0xf1   : > { %v2374_v54 = vsub.f32 %v2244_v5, %v400_v52  ;;  %v369_v56 = vpop.xlane.xlu0 %368  ;;  %911 = vmatprep.subr.bf16.mxu0 %v1773_v49  ;;  %1684 = vmatprep.subr.bf16.mxu1 %v1773_v49 }
  0xf2   : > { %v371_v57 = vpop.xlane.xlu1 %370  ;;  %v415_v58 = vmul.f32 0.0078125, %v369_v56  ;;  %v463_v59 = vmul.f32 %v2371_v53, %v2371_v53 }
  0xf3   : > { %v416_v60 = vmul.f32 0.0078125, %v371_v57  ;;  %v464_v63 = vmul.f32 %v2374_v54, %v2374_v54 }
  0xf4   : > { %v2381_v61 = vsub.f32 %v2249_v6, %v415_v58  ;;  %527 = vadd.xlane.f32.xlu1 %v478_v55  ;;  %497 = vadd.xlane.f32.xlu0 %v463_v59  ;;  %v1778_v59 = vld [vmem:[#allocation5 + $0x30] ss:$8 sps:$4 sm:$0xff]  }
  0xf5   : > { %v2384_v62 = vsub.f32 %v2252_v7, %v416_v60  ;;  %v341_v0 = vpop.xlane.xlu0 %340 }
  0xf6   : > { %v343_v1 = vpop.xlane.xlu1 %342  ;;  %v401_v2 = vmul.f32 0.0078125, %v341_v0  ;;  %v479_v3 = vmul.f32 %v2381_v61, %v2381_v61 }
  0xf7   : > { %v402_v4 = vmul.f32 0.0078125, %v343_v1  ;;  %v480_v7 = vmul.f32 %v2384_v62, %v2384_v62 }
  0xf8   : > { %v2391_v5 = vsub.f32 %v2255_v8, %v401_v2  ;;  %499 = vadd.xlane.f32.xlu1 %v464_v63  ;;  %529 = vadd.xlane.f32.xlu0 %v479_v3 }
  0xf9   : > { %v2394_v6 = vsub.f32 %v2258_v9, %v402_v4  ;;  %v373_v32 = vpop.xlane.xlu0 %372 }
  0xfa   : > { %v375_v33 = vpop.xlane.xlu1 %374  ;;  %v417_v35 = vmul.f32 0.0078125, %v373_v32  ;;  %v465_v36 = vmul.f32 %v2391_v5, %v2391_v5 }
  0xfb   : > { %v418_v37 = vmul.f32 0.0078125, %v375_v33  ;;  %v466_v41 = vmul.f32 %v2394_v6, %v2394_v6 }
  0xfc   : > { %v2401_v8 = vsub.f32 %v2265_v10, %v417_v35  ;;  %531 = vadd.xlane.f32.xlu1 %v480_v7  ;;  %501 = vadd.xlane.f32.xlu0 %v465_v36  ;;  %v1775_v10 = vld [vmem:[#allocation5 + $0x20] ss:$8 sps:$4 sm:$0xff]  }
  0xfd   : > { %v2404_v9 = vsub.f32 %v2268_v11, %v418_v37  ;;  %v345_v42 = vpop.xlane.xlu0 %344  ;;  %912 = vmatpush1.bf16.msra.mxu0 %v1775_v10  ;;  %1692 = vmatpush1.bf16.msra.mxu1 %v1775_v10  ;;  %v1781_v7 = vld [vmem:[#allocation5 + $0x40] ss:$8 sps:$4 sm:$0xff]  }
  0xfe   : > { %v347_v43 = vpop.xlane.xlu1 %346  ;;  %v403_v44 = vmul.f32 0.0078125, %v345_v42  ;;  %v481_v47 = vmul.f32 %v2401_v8, %v2401_v8 }
  0xff   : > { %v404_v48 = vmul.f32 0.0078125, %v347_v43  ;;  %v482_v51 = vmul.f32 %v2404_v9, %v2404_v9 }
 0x100   : > { %v2411_v50 = vsub.f32 %v2273_v12, %v403_v44  ;;  %503 = vadd.xlane.f32.xlu1 %v466_v41  ;;  %533 = vadd.xlane.f32.xlu0 %v481_v47  ;;  %v1776_v12 = vld [vmem:[#allocation5 + $0x34] ss:$8 sps:$4 sm:$0xff]   ;;  %v1784_v41 = vld [vmem:[#allocation5 + $0x50] ss:$8 sps:$4 sm:$0xff]  }
 0x101   : > { %v2414_v11 = vsub.f32 %v2276_v13, %v404_v48  ;;  %v377_v52 = vpop.xlane.xlu0 %376  ;;  %913 = vmatprep.subr.bf16.mxu0 %v1776_v12  ;;  %1685 = vmatprep.subr.bf16.mxu1 %v1776_v12 }
 0x102   : > { %v379_v55 = vpop.xlane.xlu1 %378  ;;  %v419_v56 = vmul.f32 0.0078125, %v377_v52  ;;  %v467_v57 = vmul.f32 %v2411_v50, %v2411_v50  ;;  %914 = vmatpush1.bf16.msra.mxu0 %v1778_v59  ;;  %1693 = vmatpush1.bf16.msra.mxu1 %v1778_v59 }
 0x103   : > { %v420_v58 = vmul.f32 0.0078125, %v379_v55  ;;  %v468_v63 = vmul.f32 %v2414_v11, %v2414_v11 }
 0x104   : > { %v2421_v60 = vsub.f32 %v2281_v14, %v419_v56  ;;  %535 = vadd.xlane.f32.xlu1 %v482_v51  ;;  %505 = vadd.xlane.f32.xlu0 %v467_v57  ;;  %v1779_v14 = vld [vmem:[#allocation5 + $0x44] ss:$8 sps:$4 sm:$0xff]   ;;  %v1787_v51 = vld [vmem:[#allocation5 + $0x60] ss:$8 sps:$4 sm:$0xff]  }
 0x105   : > { %v2424_v13 = vsub.f32 %v2284_v15, %v420_v58  ;;  %v349_v0 = vpop.xlane.xlu0 %348  ;;  %915 = vmatprep.subr.bf16.mxu0 %v1779_v14  ;;  %1686 = vmatprep.subr.bf16.mxu1 %v1779_v14 }
 0x106   : > { %v351_v1 = vpop.xlane.xlu1 %350  ;;  %v405_v2 = vmul.f32 0.0078125, %v349_v0  ;;  %v483_v3 = vmul.f32 %v2421_v60, %v2421_v60  ;;  %916 = vmatpush1.bf16.msra.mxu0 %v1781_v7  ;;  %1694 = vmatpush1.bf16.msra.mxu1 %v1781_v7 }
 0x107   : > { %v406_v4 = vmul.f32 0.0078125, %v351_v1  ;;  %v484_v33 = vmul.f32 %v2424_v13, %v2424_v13 }
 0x108   : > { %v2431_v32 = vsub.f32 %v2289_v16, %v405_v2  ;;  %507 = vadd.xlane.f32.xlu1 %v468_v63  ;;  %537 = vadd.xlane.f32.xlu0 %v483_v3  ;;  %v1782_v16 = vld [vmem:[#allocation5 + $0x54] ss:$8 sps:$4 sm:$0xff]   ;;  %v1790_v63 = vld [vmem:[#allocation5 + $0x70] ss:$8 sps:$4 sm:$0xff]  }
 0x109   : > { %v2434_v15 = vsub.f32 %v2292_v17, %v406_v4  ;;  %v381_v34 = vpop.xlane.xlu0 %380  ;;  %917 = vmatprep.subr.bf16.mxu0 %v1782_v16  ;;  %1687 = vmatprep.subr.bf16.mxu1 %v1782_v16 }
 0x10a   : > { %v383_v35 = vpop.xlane.xlu1 %382  ;;  %v421_v36 = vmul.f32 0.0078125, %v381_v34  ;;  %v469_v37 = vmul.f32 %v2431_v32, %v2431_v32  ;;  %918 = vmatpush1.bf16.msra.mxu0 %v1784_v41  ;;  %1695 = vmatpush1.bf16.msra.mxu1 %v1784_v41 }
 0x10b   : > { %v422_v40 = vmul.f32 0.0078125, %v383_v35  ;;  %v470_v43 = vmul.f32 %v2434_v15, %v2434_v15 }
 0x10c   : > { %v2441_v42 = vsub.f32 %v2297_v18, %v421_v36  ;;  %539 = vadd.xlane.f32.xlu1 %v484_v33  ;;  %509 = vadd.xlane.f32.xlu0 %v469_v37  ;;  %v1785_v18 = vld [vmem:[#allocation5 + $0x64] ss:$8 sps:$4 sm:$0xff]   ;;  %v2021_v36 = vmov 0  }
 0x10d   : > { %v2444_v17 = vsub.f32 %v2300_v19, %v422_v40  ;;  %v353_v44 = vpop.xlane.xlu0 %352  ;;  %919 = vmatprep.subr.bf16.mxu0 %v1785_v18  ;;  %1688 = vmatprep.subr.bf16.mxu1 %v1785_v18 }
 0x10e   : > { %v355_v47 = vpop.xlane.xlu1 %354  ;;  %v407_v48 = vmul.f32 0.0078125, %v353_v44  ;;  %v485_v49 = vmul.f32 %v2441_v42, %v2441_v42  ;;  %920 = vmatpush1.bf16.msra.mxu0 %v1787_v51  ;;  %1696 = vmatpush1.bf16.msra.mxu1 %v1787_v51 }
 0x10f   : > { %v408_v10 = vmul.f32 0.0078125, %v355_v47  ;;  %v486_v55 = vmul.f32 %v2444_v17, %v2444_v17  ;;  %939 = vmatprep.mubr.bf16.mxu0 %v2021_v36  ;;  %1019 = vmatprep.mubr.bf16.mxu1 %v2021_v36 }
 0x110   : > { %v2451_v52 = vsub.f32 %v2305_v20, %v407_v48  ;;  %511 = vadd.xlane.f32.xlu1 %v470_v43  ;;  %541 = vadd.xlane.f32.xlu0 %v485_v49  ;;  %v1788_v20 = vld [vmem:[#allocation5 + $0x74] ss:$8 sps:$4 sm:$0xff]  }
 0x111   : > { %v2454_v19 = vsub.f32 %v2308_v21, %v408_v10  ;;  %v385_v56 = vpop.xlane.xlu0 %384  ;;  %921 = vmatprep.subr.bf16.mxu0 %v1788_v20  ;;  %1689 = vmatprep.subr.bf16.mxu1 %v1788_v20 }
 0x112   : > { %v387_v57 = vpop.xlane.xlu1 %386  ;;  %v423_v58 = vmul.f32 0.0078125, %v385_v56  ;;  %v471_v12 = vmul.f32 %v2451_v52, %v2451_v52  ;;  %922 = vmatpush1.bf16.msra.mxu0 %v1790_v63  ;;  %1697 = vmatpush1.bf16.msra.mxu1 %v1790_v63 }
 0x113   : > { %v424_v59 = vmul.f32 0.0078125, %v387_v57  ;;  %v472_v1 = vmul.f32 %v2454_v19, %v2454_v19 }
 0x114   : > { %v2461_v0 = vsub.f32 %v2313_v22, %v423_v58  ;;  %543 = vadd.xlane.f32.xlu1 %v486_v55  ;;  %513 = vadd.xlane.f32.xlu0 %v471_v12 }
 0x115   : > { %v2464_v21 = vsub.f32 %v2316_v23, %v424_v59  ;;  %v357_v2 = vpop.xlane.xlu0 %356 }
 0x116   : > { %v359_v3 = vpop.xlane.xlu1 %358  ;;  %v409_v4 = vmul.f32 0.0078125, %v357_v2  ;;  %v487_v14 = vmul.f32 %v2461_v0, %v2461_v0 }
 0x117   : > { %v410_v7 = vmul.f32 0.0078125, %v359_v3  ;;  %v488_v33 = vmul.f32 %v2464_v21, %v2464_v21 }
 0x118   : > { %v2471_v22 = vsub.f32 %v2321_v24, %v409_v4  ;;  %515 = vadd.xlane.f32.xlu1 %v472_v1  ;;  %545 = vadd.xlane.f32.xlu0 %v487_v14 }
 0x119   : > { %v2474_v23 = vsub.f32 %v2324_v25, %v410_v7  ;;  %v389_v34 = vpop.xlane.xlu0 %388 }
 0x11a   : > { %v391_v35 = vpop.xlane.xlu1 %390  ;;  %v425_v37 = vmul.f32 0.0078125, %v389_v34  ;;  %v473_v24 = vmul.f32 %v2471_v22, %v2471_v22 }
 0x11b   : > { %v426_v40 = vmul.f32 0.0078125, %v391_v35  ;;  %v474_v41 = vmul.f32 %v2474_v23, %v2474_v23 }
 0x11c   : > { %v2483_v16 = vsub.f32 %v2329_v26, %v425_v37  ;;  %547 = vadd.xlane.f32.xlu1 %v488_v33  ;;  %517 = vadd.xlane.f32.xlu0 %v473_v24 }
 0x11d   : > { %v2486_v25 = vsub.f32 %v2332_v27, %v426_v40  ;;  %v361_v43 = vpop.xlane.xlu0 %360 }
 0x11e   : > { %v363_v44 = vpop.xlane.xlu1 %362  ;;  %v411_v47 = vmul.f32 0.0078125, %v361_v43  ;;  %v489_v48 = vmul.f32 %v2483_v16, %v2483_v16 }
 0x11f   : > { %v412_v49 = vmul.f32 0.0078125, %v363_v44  ;;  %v490_v27 = vmul.f32 %v2486_v25, %v2486_v25 }
 0x120   : > { %v2493_v10 = vsub.f32 %v2337_v28, %v411_v47  ;;  %519 = vadd.xlane.f32.xlu1 %v474_v41  ;;  %549 = vadd.xlane.f32.xlu0 %v489_v48 }
 0x121   : > { %v2496_v26 = vsub.f32 %v2340_v29, %v412_v49  ;;  %v393_v18 = vpop.xlane.xlu0 %392 }
 0x122   : > { %v395_v51 = vpop.xlane.xlu1 %394  ;;  %v427_v55 = vmul.f32 0.0078125, %v393_v18  ;;  %v475_v56 = vmul.f32 %v2493_v10, %v2493_v10 }
 0x123   : > { %v428_v57 = vmul.f32 0.0078125, %v395_v51  ;;  %v476_v29 = vmul.f32 %v2496_v26, %v2496_v26 }
 0x124   : > { %v2503_v58 = vsub.f32 %v2345_v30, %v427_v55  ;;  %551 = vadd.xlane.f32.xlu1 %v490_v27  ;;  %521 = vadd.xlane.f32.xlu0 %v475_v56  ;;  %v2517_v27 = vld [vmem:[%s2811_s1] ss:$0 sm:$0xff] }
 0x125   : > { %v2506_v28 = vsub.f32 %v2348_v31, %v428_v57 }
 0x126   : > { %v491_v12 = vmul.f32 %v2503_v58, %v2503_v58 }
 0x127   : > { %v492_v59 = vmul.f32 %v2506_v28, %v2506_v28 }
 0x128   : > { %523 = vadd.xlane.f32.xlu1 %v476_v29  ;;  %553 = vadd.xlane.f32.xlu0 %v491_v12  ;;  %v2523_v29 = vld [vmem:[%s2812_s2] ss:$0 sm:$0xff] }
 0x12c   : > { %555 = vadd.xlane.f32.xlu1 %v492_v59 }
 0x179   : > { %v494_v20 = vpop.xlane.xlu0 %493 }
 0x17a   : > { %v557_v30 = vmul.f32 0.0078125, %v494_v20 }
 0x17c   : > { %v589_v63 = vadd.f32 1e-05, %v557_v30 }
 0x17d   : > { %v496_v1 = vpop.xlane.xlu1 %495  ;;  %v526_v2 = vpop.xlane.xlu0 %525 }
 0x17e   : > { %1791 = vrsqrt.f32 %v589_v63  ;;  %v558_v31 = vmul.f32 0.0078125, %v496_v1  ;;  %v573_v3 = vmul.f32 0.0078125, %v526_v2 }
 0x180   : > { %v590_v4 = vadd.f32 1e-05, %v558_v31  ;;  %v605_v14 = vadd.f32 1e-05, %v573_v3 }
 0x181   : > { %v528_v7 = vpop.xlane.xlu1 %527  ;;  %v498_v33 = vpop.xlane.xlu0 %497 }
 0x182   : > { %1793 = vrsqrt.f32 %v590_v4  ;;  %v574_v34 = vmul.f32 0.0078125, %v528_v7  ;;  %v559_v35 = vmul.f32 0.0078125, %v498_v33 }
 0x183   : > { %1795 = vrsqrt.f32 %v605_v14 }
 0x184   : > { %v606_v37 = vadd.f32 1e-05, %v574_v34  ;;  %v591_v24 = vadd.f32 1e-05, %v559_v35 }
 0x185   : > { %v500_v40 = vpop.xlane.xlu1 %499  ;;  %v530_v41 = vpop.xlane.xlu0 %529 }
 0x186   : > { %1797 = vrsqrt.f32 %v606_v37  ;;  %v560_v43 = vmul.f32 0.0078125, %v500_v40  ;;  %v575_v44 = vmul.f32 0.0078125, %v530_v41 }
 0x187   : > { %1799 = vrsqrt.f32 %v591_v24 }
 0x188   : > { %v1792_v47 = vpop.eup %1791  ;;  %v592_v48 = vadd.f32 1e-05, %v560_v43  ;;  %v607_v49 = vadd.f32 1e-05, %v575_v44 }
 0x189   : > { %v532_v18 = vpop.xlane.xlu1 %531  ;;  %v502_v51 = vpop.xlane.xlu0 %501  ;;  %v653_v55 = vmul.f32 %v1792_v47, %v2353_v38 }
 0x18a   : > { %1801 = vrsqrt.f32 %v592_v48  ;;  %v576_v56 = vmul.f32 0.0078125, %v532_v18  ;;  %v561_v57 = vmul.f32 0.0078125, %v502_v51 }
 0x18b   : > { %1803 = vrsqrt.f32 %v607_v49  ;;  %v692_v12 = vmul.f32 %v2517_v27, %v653_v55 }
 0x18c   : > { %v1794_v59 = vpop.eup %1793  ;;  %v608_v20 = vadd.f32 1e-05, %v576_v56  ;;  %v593_v30 = vadd.f32 1e-05, %v561_v57 }
 0x18d   : > { %v1796_v63 = vpop.eup %1795  ;;  %v504_v1 = vpop.xlane.xlu1 %503  ;;  %v654_v31 = vmul.f32 %v1794_v59, %v2361_v45  ;;  %v731_v38 = vadd.f32 %v2523_v29, %v692_v12 }
 0x18e   : > { %v534_v2 = vpop.xlane.xlu0 %533  ;;  %1805 = vrsqrt.f32 %v608_v20  ;;  %v562_v3 = vmul.f32 0.0078125, %v504_v1  ;;  %v669_v14 = vmul.f32 %v1796_v63, %v2356_v39 }
 0x18f   : > { %v577_v4 = vmul.f32 0.0078125, %v534_v2  ;;  %1807 = vrsqrt.f32 %v593_v30  ;;  %v693_v7 = vmul.f32 %v2517_v27, %v654_v31  ;;  %v763_v43 = vmax.f32 %v731_v38, 0.0 }
 0x190   : > { %v1798_v33 = vpop.eup %1797  ;;  %v594_v34 = vadd.f32 1e-05, %v562_v3  ;;  %v708_v37 = vmul.f32 %v2517_v27, %v669_v14 }
 0x191   : > { %v609_v35 = vadd.f32 1e-05, %v577_v4  ;;  %v1800_v24 = vpop.eup %1799  ;;  %v536_v40 = vpop.xlane.xlu1 %535  ;;  %v732_v45 = vadd.f32 %v2523_v29, %v693_v7  ;;  %v670_v44 = vmul.f32 %v1798_v33, %v2364_v46 }
 0x192   : > { %v506_v41 = vpop.xlane.xlu0 %505  ;;  %1809 = vrsqrt.f32 %v594_v34  ;;  %v578_v47 = vmul.f32 0.0078125, %v536_v40  ;;  %v747_v39 = vadd.f32 %v2523_v29, %v708_v37  ;;  %v655_v51 = vmul.f32 %v1800_v24, %v2371_v53 }
 0x193   : > { %v563_v48 = vmul.f32 0.0078125, %v506_v41  ;;  %1811 = vrsqrt.f32 %v609_v35  ;;  %v764_v49 = vmax.f32 %v732_v45, 0.0  ;;  %v709_v18 = vmul.f32 %v2517_v27, %v670_v44 }
 0x194   : > { %v1802_v55 = vpop.eup %1801  ;;  %v610_v56 = vadd.f32 1e-05, %v578_v47  ;;  %v779_v12 = vmax.f32 %v747_v39, 0.0  ;;  %v694_v2 = vmul.f32 %v2517_v27, %v655_v51 }
 0x195   : > { %v595_v57 = vadd.f32 1e-05, %v563_v48  ;;  %v1804_v59 = vpop.eup %1803  ;;  %v508_v20 = vpop.xlane.xlu1 %507  ;;  %v795_v63 = vpack.c.bf16 %v764_v49, %v763_v43  ;;  %v748_v46 = vadd.f32 %v2523_v29, %v709_v18  ;;  %v656_v1 = vmul.f32 %v1802_v55, %v2374_v54 }
 0x196   : > { %v538_v30 = vpop.xlane.xlu0 %537  ;;  %1813 = vrsqrt.f32 %v610_v56  ;;  %v564_v31 = vmul.f32 0.0078125, %v508_v20  ;;  %v671_v3 = vmul.f32 %v1804_v59, %v2381_v61  ;;  %v733_v14 = vadd.f32 %v2523_v29, %v694_v2 }
 0x197   : > { %v579_v38 = vmul.f32 0.0078125, %v538_v30  ;;  %1815 = vrsqrt.f32 %v595_v57  ;;  %940 = vmatmul.mubr.bf16.vlgmr.msra.gmra.mrb[0].mxu0 %v795_v63  ;;  %v780_v53 = vmax.f32 %v748_v46, 0.0  ;;  %v695_v4 = vmul.f32 %v2517_v27, %v656_v1 }
 0x198   : > { %v1806_v7 = vpop.eup %1805  ;;  %v596_v33 = vadd.f32 1e-05, %v564_v31  ;;  %949 = vmatprep.mubr.bf16.mxu0 %v2021_v36  ;;  %v710_v54 = vmul.f32 %v2517_v27, %v671_v3  ;;  %v765_v41 = vmax.f32 %v733_v14, 0.0 }
 0x199   : > { %v611_v34 = vadd.f32 1e-05, %v579_v38  ;;  %v1808_v35 = vpop.eup %1807  ;;  %v540_v37 = vpop.xlane.xlu1 %539  ;;  %v803_v40 = vpack.c.bf16 %v780_v53, %v779_v12  ;;  %v734_v61 = vadd.f32 %v2523_v29, %v695_v4  ;;  %v672_v45 = vmul.f32 %v1806_v7, %v2384_v62 }
 0x19a   : > { %v510_v24 = vpop.xlane.xlu0 %509  ;;  %1817 = vrsqrt.f32 %v596_v33  ;;  %v580_v43 = vmul.f32 0.0078125, %v540_v37  ;;  %v749_v47 = vadd.f32 %v2523_v29, %v710_v54  ;;  %v657_v49 = vmul.f32 %v1808_v35, %v2391_v5 }
 0x19b   : > { %v565_v44 = vmul.f32 0.0078125, %v510_v24  ;;  %1819 = vrsqrt.f32 %v611_v34  ;;  %1020 = vmatmul.mubr.bf16.vlgmr.msra.gmra.mrb[0].mxu1 %v803_v40  ;;  %v766_v48 = vmax.f32 %v734_v61, 0.0  ;;  %v711_v39 = vmul.f32 %v2517_v27, %v672_v45 }
 0x19c   : > { %v1810_v18 = vpop.eup %1809  ;;  %v612_v51 = vadd.f32 1e-05, %v580_v43  ;;  %1029 = vmatprep.mubr.bf16.mxu1 %v2021_v36  ;;  %v781_v56 = vmax.f32 %v749_v47, 0.0  ;;  %v696_v63 = vmul.f32 %v2517_v27, %v657_v49 }
 0x19d   : > { %v597_v55 = vadd.f32 1e-05, %v565_v44  ;;  %v1812_v57 = vpop.eup %1811  ;;  %v512_v62 = vpop.xlane.xlu1 %511  ;;  %v796_v59 = vpack.c.bf16 %v766_v48, %v765_v41  ;;  %v750_v20 = vadd.f32 %v2523_v29, %v711_v39  ;;  %v658_v30 = vmul.f32 %v1810_v18, %v2394_v6 }
 0x19e   : > { %v542_v12 = vpop.xlane.xlu0 %541  ;;  %1821 = vrsqrt.f32 %v612_v51  ;;  %v566_v46 = vmul.f32 0.0078125, %v512_v62  ;;  %v673_v5 = vmul.f32 %v1812_v57, %v2401_v8  ;;  %v735_v38 = vadd.f32 %v2523_v29, %v696_v63 }
 0x19f   : > { %v581_v1 = vmul.f32 0.0078125, %v542_v12  ;;  %1823 = vrsqrt.f32 %v597_v55  ;;  %950 = vmatmul.mubr.bf16.gmra.mrb[4].mxu0 %v796_v59  ;;  %v782_v2 = vmax.f32 %v750_v20, 0.0  ;;  %v697_v31 = vmul.f32 %v2517_v27, %v658_v30 }
 0x1a0   : > { %v1814_v3 = vpop.eup %1813  ;;  %v598_v53 = vadd.f32 1e-05, %v566_v46  ;;  %959 = vmatprep.mubr.bf16.mxu0 %v2021_v36  ;;  %v712_v6 = vmul.f32 %v2517_v27, %v673_v5  ;;  %v767_v54 = vmax.f32 %v735_v38, 0.0 }
 0x1a1   : > { %v613_v4 = vadd.f32 1e-05, %v581_v1  ;;  %v1816_v14 = vpop.eup %1815  ;;  %v544_v7 = vpop.xlane.xlu1 %543  ;;  %v804_v34 = vpack.c.bf16 %v782_v2, %v781_v56  ;;  %v736_v8 = vadd.f32 %v2523_v29, %v697_v31  ;;  %v674_v35 = vmul.f32 %v1814_v3, %v2404_v9 }
 0x1a2   : > { %v514_v33 = vpop.xlane.xlu0 %513  ;;  %1825 = vrsqrt.f32 %v598_v53  ;;  %v582_v37 = vmul.f32 0.0078125, %v544_v7  ;;  %v751_v40 = vadd.f32 %v2523_v29, %v712_v6  ;;  %v659_v45 = vmul.f32 %v1816_v14, %v2411_v50 }
 0x1a3   : > { %v567_v24 = vmul.f32 0.0078125, %v514_v33  ;;  %1827 = vrsqrt.f32 %v613_v4  ;;  %1030 = vmatmul.mubr.bf16.gmra.mrb[4].mxu1 %v804_v34  ;;  %v768_v61 = vmax.f32 %v736_v8, 0.0  ;;  %v713_v41 = vmul.f32 %v2517_v27, %v674_v35 }
 0x1a4   : > { %v1818_v43 = vpop.eup %1817  ;;  %v614_v44 = vadd.f32 1e-05, %v582_v37  ;;  %1039 = vmatprep.mubr.bf16.mxu1 %v2021_v36  ;;  %v783_v48 = vmax.f32 %v751_v40, 0.0  ;;  %v698_v56 = vmul.f32 %v2517_v27, %v659_v45 }
 0x1a5   : > { %v599_v47 = vadd.f32 1e-05, %v567_v24  ;;  %v1820_v39 = vpop.eup %1819  ;;  %v516_v9 = vpop.xlane.xlu1 %515  ;;  %v797_v18 = vpack.c.bf16 %v768_v61, %v767_v54  ;;  %v752_v51 = vadd.f32 %v2523_v29, %v713_v41  ;;  %v660_v55 = vmul.f32 %v1818_v43, %v2414_v11 }
 0x1a6   : > { %v546_v49 = vpop.xlane.xlu0 %545  ;;  %1829 = vrsqrt.f32 %v614_v44  ;;  %v568_v57 = vmul.f32 0.0078125, %v516_v9  ;;  %v675_v50 = vmul.f32 %v1820_v39, %v2421_v60  ;;  %v737_v20 = vadd.f32 %v2523_v29, %v698_v56 }
 0x1a7   : > { %v583_v62 = vmul.f32 0.0078125, %v546_v49  ;;  %1831 = vrsqrt.f32 %v599_v47  ;;  %960 = vmatmul.mubr.bf16.gmra.mrb[8].mxu0 %v797_v18  ;;  %v784_v12 = vmax.f32 %v752_v51, 0.0  ;;  %v699_v59 = vmul.f32 %v2517_v27, %v660_v55 }
 0x1a8   : > { %v1822_v30 = vpop.eup %1821  ;;  %v600_v63 = vadd.f32 1e-05, %v568_v57  ;;  %969 = vmatprep.mubr.bf16.mxu0 %v2021_v36  ;;  %v714_v11 = vmul.f32 %v2517_v27, %v675_v50  ;;  %v769_v38 = vmax.f32 %v737_v20, 0.0 }
 0x1a9   : > { %v615_v46 = vadd.f32 1e-05, %v583_v62  ;;  %v1824_v1 = vpop.eup %1823  ;;  %v548_v5 = vpop.xlane.xlu1 %547  ;;  %v805_v31 = vpack.c.bf16 %v784_v12, %v783_v48  ;;  %v738_v60 = vadd.f32 %v2523_v29, %v699_v59  ;;  %v676_v3 = vmul.f32 %v1822_v30, %v2424_v13 }
 0x1aa   : > { %v518_v2 = vpop.xlane.xlu0 %517  ;;  %1833 = vrsqrt.f32 %v600_v63  ;;  %v584_v53 = vmul.f32 0.0078125, %v548_v5  ;;  %v753_v6 = vadd.f32 %v2523_v29, %v714_v11  ;;  %v661_v33 = vmul.f32 %v1824_v1, %v2431_v32 }
 0x1ab   : > { %v569_v4 = vmul.f32 0.0078125, %v518_v2  ;;  %1835 = vrsqrt.f32 %v615_v46  ;;  %1040 = vmatmul.mubr.bf16.gmra.mrb[8].mxu1 %v805_v31  ;;  %v770_v14 = vmax.f32 %v738_v60, 0.0  ;;  %v715_v7 = vmul.f32 %v2517_v27, %v676_v3 }
 0x1ac   : > { %v1826_v34 = vpop.eup %1825  ;;  %v616_v8 = vadd.f32 1e-05, %v584_v53  ;;  %1049 = vmatprep.mubr.bf16.mxu1 %v2021_v36  ;;  %v785_v35 = vmax.f32 %v753_v6, 0.0  ;;  %v700_v45 = vmul.f32 %v2517_v27, %v661_v33 }
 0x1ad   : > { %v601_v54 = vadd.f32 1e-05, %v569_v4  ;;  %v1828_v37 = vpop.eup %1827  ;;  %v520_v13 = vpop.xlane.xlu1 %519  ;;  %v798_v40 = vpack.c.bf16 %v770_v14, %v769_v38  ;;  %v754_v61 = vadd.f32 %v2523_v29, %v715_v7  ;;  %v662_v41 = vmul.f32 %v1826_v34, %v2434_v15 }
 0x1ae   : > { %v550_v24 = vpop.xlane.xlu0 %549  ;;  %1837 = vrsqrt.f32 %v616_v8  ;;  %v570_v43 = vmul.f32 0.0078125, %v520_v13  ;;  %v677_v32 = vmul.f32 %v1828_v37, %v2441_v42  ;;  %v739_v39 = vadd.f32 %v2523_v29, %v700_v45 }
 0x1af   : > { %v585_v44 = vmul.f32 0.0078125, %v550_v24  ;;  %1839 = vrsqrt.f32 %v601_v54  ;;  %970 = vmatmul.mubr.bf16.gmra.mrb[12].mxu0 %v798_v40  ;;  %v786_v47 = vmax.f32 %v754_v61, 0.0  ;;  %v701_v48 = vmul.f32 %v2517_v27, %v662_v41 }
 0x1b0   : > { %v1830_v9 = vpop.eup %1829  ;;  %v602_v49 = vadd.f32 1e-05, %v570_v43  ;;  %979 = vmatprep.mubr.bf16.mxu0 %v2021_v36  ;;  %v716_v15 = vmul.f32 %v2517_v27, %v677_v32  ;;  %v771_v62 = vmax.f32 %v739_v39, 0.0 }
 0x1b1   : > { %v617_v18 = vadd.f32 1e-05, %v585_v44  ;;  %v1832_v51 = vpop.eup %1831  ;;  %v552_v55 = vpop.xlane.xlu1 %551  ;;  %v806_v57 = vpack.c.bf16 %v786_v47, %v785_v35  ;;  %v740_v42 = vadd.f32 %v2523_v29, %v701_v48  ;;  %v678_v50 = vmul.f32 %v1830_v9, %v2444_v17 }
 0x1b2   : > { %v522_v56 = vpop.xlane.xlu0 %521  ;;  %1841 = vrsqrt.f32 %v602_v49  ;;  %v586_v12 = vmul.f32 0.0078125, %v552_v55  ;;  %v755_v20 = vadd.f32 %v2523_v29, %v716_v15  ;;  %v663_v46 = vmul.f32 %v1832_v51, %v2451_v52 }
 0x1b3   : > { %v571_v59 = vmul.f32 0.0078125, %v522_v56  ;;  %1843 = vrsqrt.f32 %v617_v18  ;;  %1050 = vmatmul.mubr.bf16.gmra.mrb[12].mxu1 %v806_v57  ;;  %v772_v30 = vmax.f32 %v740_v42, 0.0  ;;  %v717_v63 = vmul.f32 %v2517_v27, %v678_v50 }
 0x1b4   : > { %v1834_v11 = vpop.eup %1833  ;;  %v618_v1 = vadd.f32 1e-05, %v586_v12  ;;  %1059 = vmatprep.mubr.bf16.mxu1 %v2021_v36  ;;  %v787_v2 = vmax.f32 %v755_v20, 0.0  ;;  %v702_v4 = vmul.f32 %v2517_v27, %v663_v46 }
 0x1b5   : > { %v603_v5 = vadd.f32 1e-05, %v571_v59  ;;  %v1836_v31 = vpop.eup %1835  ;;  %v524_v17 = vpop.xlane.xlu1 %523  ;;  %v799_v38 = vpack.c.bf16 %v772_v30, %v771_v62  ;;  %v756_v3 = vadd.f32 %v2523_v29, %v717_v63  ;;  %v664_v53 = vmul.f32 %v1834_v11, %v2454_v19 }
 0x1b6   : > { %v554_v60 = vpop.xlane.xlu0 %553  ;;  %1845 = vrsqrt.f32 %v618_v1  ;;  %v572_v6 = vmul.f32 0.0078125, %v524_v17  ;;  %v679_v52 = vmul.f32 %v1836_v31, %v2461_v0  ;;  %v741_v34 = vadd.f32 %v2523_v29, %v702_v4 }
 0x1b7   : > { %v587_v14 = vmul.f32 0.0078125, %v554_v60  ;;  %1847 = vrsqrt.f32 %v603_v5  ;;  %980 = vmatmul.mubr.bf16.gmra.mrb[16].mxu0 %v799_v38  ;;  %v788_v7 = vmax.f32 %v756_v3, 0.0  ;;  %v703_v33 = vmul.f32 %v2517_v27, %v664_v53 }
 0x1b8   : > { %v1838_v8 = vpop.eup %1837  ;;  %v604_v54 = vadd.f32 1e-05, %v572_v6  ;;  %989 = vmatprep.mubr.bf16.mxu0 %v2021_v36  ;;  %v718_v19 = vmul.f32 %v2517_v27, %v679_v52  ;;  %v773_v41 = vmax.f32 %v741_v34, 0.0 }
 0x1b9   : > { %v619_v35 = vadd.f32 1e-05, %v587_v14  ;;  %v1840_v37 = vpop.eup %1839  ;;  %v556_v13 = vpop.xlane.xlu1 %555  ;;  %v807_v24 = vpack.c.bf16 %v788_v7, %v787_v2  ;;  %v742_v40 = vadd.f32 %v2523_v29, %v703_v33  ;;  %v680_v0 = vmul.f32 %v1838_v8, %v2464_v21 }
 0x1ba   : > { %1849 = vrsqrt.f32 %v604_v54  ;;  %v588_v61 = vmul.f32 0.0078125, %v556_v13  ;;  %v665_v45 = vmul.f32 %v1840_v37, %v2471_v22  ;;  %v757_v32 = vadd.f32 %v2523_v29, %v718_v19 }
 0x1bb   : > { %1851 = vrsqrt.f32 %v619_v35  ;;  %1060 = vmatmul.mubr.bf16.gmra.mrb[16].mxu1 %v807_v24  ;;  %v774_v43 = vmax.f32 %v742_v40, 0.0  ;;  %v719_v44 = vmul.f32 %v2517_v27, %v680_v0 }
 0x1bc   : > { %v1842_v47 = vpop.eup %1841  ;;  %v620_v48 = vadd.f32 1e-05, %v588_v61  ;;  %1069 = vmatprep.mubr.bf16.mxu1 %v2021_v36  ;;  %v704_v39 = vmul.f32 %v2517_v27, %v665_v45  ;;  %v789_v15 = vmax.f32 %v757_v32, 0.0 }
 0x1bd   : > { %v1844_v9 = vpop.eup %1843  ;;  %v800_v21 = vpack.c.bf16 %v774_v43, %v773_v41  ;;  %v758_v49 = vadd.f32 %v2523_v29, %v719_v44  ;;  %v666_v18 = vmul.f32 %v1842_v47, %v2474_v23 }
 0x1be   : > { %1853 = vrsqrt.f32 %v620_v48  ;;  %v681_v22 = vmul.f32 %v1844_v9, %v2483_v16  ;;  %v743_v56 = vadd.f32 %v2523_v29, %v704_v39 }
 0x1bf   : > { %990 = vmatmul.mubr.bf16.gmra.mrb[20].mxu0 %v800_v21  ;;  %v790_v51 = vmax.f32 %v758_v49, 0.0  ;;  %v705_v55 = vmul.f32 %v2517_v27, %v666_v18 }
 0x1c0   : > { %v1846_v57 = vpop.eup %1845  ;;  %999 = vmatprep.mubr.bf16.mxu0 %v2021_v36  ;;  %v720_v42 = vmul.f32 %v2517_v27, %v681_v22  ;;  %v775_v59 = vmax.f32 %v743_v56, 0.0 }
 0x1c1   : > { %v1848_v62 = vpop.eup %1847  ;;  %v808_v50 = vpack.c.bf16 %v790_v51, %v789_v15  ;;  %v744_v12 = vadd.f32 %v2523_v29, %v705_v55  ;;  %v682_v23 = vmul.f32 %v1846_v57, %v2486_v25 }
 0x1c2   : > { %v667_v16 = vmul.f32 %v1848_v62, %v2493_v10  ;;  %v759_v63 = vadd.f32 %v2523_v29, %v720_v42 }
 0x1c3   : > { %1070 = vmatmul.mubr.bf16.gmra.mrb[20].mxu1 %v808_v50  ;;  %v776_v20 = vmax.f32 %v744_v12, 0.0  ;;  %v721_v30 = vmul.f32 %v2517_v27, %v682_v23 }
 0x1c4   : > { %v1850_v46 = vpop.eup %1849  ;;  %1079 = vmatprep.mubr.bf16.mxu1 %v2021_v36  ;;  %v706_v11 = vmul.f32 %v2517_v27, %v667_v16  ;;  %v791_v31 = vmax.f32 %v759_v63, 0.0 }
 0x1c5   : > { %v1852_v1 = vpop.eup %1851  ;;  %v801_v5 = vpack.c.bf16 %v776_v20, %v775_v59  ;;  %v760_v2 = vadd.f32 %v2523_v29, %v721_v30  ;;  %v668_v25 = vmul.f32 %v1850_v46, %v2496_v26 }
 0x1c6   : > { %v683_v10 = vmul.f32 %v1852_v1, %v2503_v58  ;;  %v745_v38 = vadd.f32 %v2523_v29, %v706_v11 }
 0x1c7   : > { %1000 = vmatmul.mubr.bf16.gmra.mrb[24].mxu0 %v801_v5  ;;  %v792_v17 = vmax.f32 %v760_v2, 0.0  ;;  %v707_v60 = vmul.f32 %v2517_v27, %v668_v25 }
 0x1c8   : > { %v1854_v3 = vpop.eup %1853  ;;  %1009 = vmatprep.mubr.bf16.mxu0 %v2021_v36  ;;  %v722_v53 = vmul.f32 %v2517_v27, %v683_v10  ;;  %v777_v58 = vmax.f32 %v745_v38, 0.0 }
 0x1c9   : > { %v809_v4 = vpack.c.bf16 %v792_v17, %v791_v31  ;;  %v746_v6 = vadd.f32 %v2523_v29, %v707_v60  ;;  %v684_v26 = vmul.f32 %v1854_v3, %v2506_v28  ;;  %v2637_v28 = vld [vmem:[%s2814_s4] ss:$0 sm:$0xff] }
 0x1ca   : > { %v761_v7 = vadd.f32 %v2523_v29, %v722_v53 }
 0x1cb   : > { %1080 = vmatmul.mubr.bf16.gmra.mrb[24].mxu1 %v809_v4  ;;  %v778_v14 = vmax.f32 %v746_v6, 0.0  ;;  %v723_v52 = vmul.f32 %v2517_v27, %v684_v26 }
 0x1cc   : > { %1089 = vmatprep.mubr.bf16.mxu1 %v2021_v36  ;;  %v793_v8 = vmax.f32 %v761_v7, 0.0 }
 0x1cd   : > { %v802_v33 = vpack.c.bf16 %v778_v14, %v777_v58  ;;  %v762_v34 = vadd.f32 %v2523_v29, %v723_v52 }
 0x1cf   : > { %1010 = vmatmul.mubr.bf16.gmra.mrb[28].mxu0 %v802_v33  ;;  %v794_v54 = vmax.f32 %v762_v34, 0.0 }
 0x1d1   : > { %v810_v35 = vpack.c.bf16 %v794_v54, %v793_v8 }
 0x1d3   : > { %1090 = vmatmul.mubr.bf16.gmra.mrb[28].mxu1 %v810_v35 }
 0x26a   : > { %v941_v27 = vpop.f32.mrb[0].mxu0 }
 0x26b   : > { %v943_v19 = vpop.f32.mrb[1].mxu0 }
 0x26c   : > { %v1267_v37 = vadd.f32 %v2637_v28, %v943_v19  ;;  %v945_v36 = vpop.f32.mrb[2].mxu0 }
 0x26d   : > { %v1590_v13 = vpack.c.bf16 %v945_v36, %v941_v27  ;;  %v947_v24 = vpop.f32.mrb[3].mxu0 }
 0x26e   : > { %1299 = vst [vmem:[%s2643_s8] sm:$0xff] %v1267_v37  ;;  %v1268_v29 = vadd.f32 %v2637_v28, %v947_v24  ;;  %v1021_v40 = vpop.f32.mrb[0].mxu1 }
 0x26f   : > { %1591 = vst [vmem:[%s2647_s15] sm:$0xff] %v1590_v13   ;;  %v1023_v0 = vpop.f32.mrb[1].mxu1 }
 0x270   : > { %1300 = vst [vmem:[%s2643_s8 + $0x8] sm:$0xff] %v1268_v29  ;;  %v1283_v61 = vadd.f32 %v2637_v28, %v1023_v0  ;;  %v1025_v41 = vpop.f32.mrb[2].mxu1 }
 0x271   : > { %v1630_v45 = vpack.c.bf16 %v1025_v41, %v1021_v40  ;;  %v1027_v43 = vpop.f32.mrb[3].mxu1 }
 0x272   : > { %1315 = vst [vmem:[%s2643_s8 + $0x80] sm:$0xff] %v1283_v61  ;;  %v1284_v44 = vadd.f32 %v2637_v28, %v1027_v43  ;;  %v951_v32 = vpop.f32.mrb[4].mxu0 }
 0x273   : > { %1674 = vst [vmem:[%s2647_s15 + $0x40] sm:$0xff] %v1630_v45   ;;  %v953_v47 = vpop.f32.mrb[5].mxu0 }
 0x274   : > { %1316 = vst [vmem:[%s2643_s8 + $0x88] sm:$0xff] %v1284_v44  ;;  %v1269_v48 = vadd.f32 %v2637_v28, %v953_v47  ;;  %v955_v39 = vpop.f32.mrb[6].mxu0 }
 0x275   : > { %v1595_v9 = vpack.c.bf16 %v955_v39, %v951_v32  ;;  %v957_v21 = vpop.f32.mrb[7].mxu0 }
 0x276   : > { %1301 = vst [vmem:[%s2643_s8 + $0x10] sm:$0xff] %v1269_v48  ;;  %v1270_v49 = vadd.f32 %v2637_v28, %v957_v21  ;;  %v1031_v18 = vpop.f32.mrb[4].mxu1 }
 0x277   : > { %1667 = vst [vmem:[%s2647_s15 + $0x8] sm:$0xff] %v1595_v9   ;;  %v1033_v22 = vpop.f32.mrb[5].mxu1 }
 0x278   : > { %1302 = vst [vmem:[%s2643_s8 + $0x18] sm:$0xff] %v1270_v49  ;;  %v1285_v15 = vadd.f32 %v2637_v28, %v1033_v22  ;;  %v1035_v51 = vpop.f32.mrb[6].mxu1 }
 0x279   : > { %v1635_v55 = vpack.c.bf16 %v1035_v51, %v1031_v18  ;;  %v1037_v56 = vpop.f32.mrb[7].mxu1 }
 0x27a   : > { %1317 = vst [vmem:[%s2643_s8 + $0x90] sm:$0xff] %v1285_v15  ;;  %v1286_v57 = vadd.f32 %v2637_v28, %v1037_v56  ;;  %v961_v42 = vpop.f32.mrb[8].mxu0 }
 0x27b   : > { %1675 = vst [vmem:[%s2647_s15 + $0x48] sm:$0xff] %v1635_v55   ;;  %v963_v62 = vpop.f32.mrb[9].mxu0 }
 0x27c   : > { %1318 = vst [vmem:[%s2643_s8 + $0x98] sm:$0xff] %v1286_v57  ;;  %v1271_v50 = vadd.f32 %v2637_v28, %v963_v62  ;;  %v965_v12 = vpop.f32.mrb[10].mxu0 }
 0x27d   : > { %v1600_v23 = vpack.c.bf16 %v965_v12, %v961_v42  ;;  %v967_v16 = vpop.f32.mrb[11].mxu0 }
 0x27e   : > { %1303 = vst [vmem:[%s2643_s8 + $0x20] sm:$0xff] %v1271_v50  ;;  %v1272_v59 = vadd.f32 %v2637_v28, %v967_v16  ;;  %v1041_v20 = vpop.f32.mrb[8].mxu1 }
 0x27f   : > { %1668 = vst [vmem:[%s2647_s15 + $0x10] sm:$0xff] %v1600_v23   ;;  %v1043_v30 = vpop.f32.mrb[9].mxu1 }
 0x280   : > { %1304 = vst [vmem:[%s2643_s8 + $0x28] sm:$0xff] %v1272_v59  ;;  %v1287_v63 = vadd.f32 %v2637_v28, %v1043_v30  ;;  %v1045_v46 = vpop.f32.mrb[10].mxu1 }
 0x281   : > { %v1640_v11 = vpack.c.bf16 %v1045_v46, %v1041_v20  ;;  %v1047_v1 = vpop.f32.mrb[11].mxu1 }
 0x282   : > { %1319 = vst [vmem:[%s2643_s8 + $0xa0] sm:$0xff] %v1287_v63  ;;  %v1288_v5 = vadd.f32 %v2637_v28, %v1047_v1  ;;  %v971_v2 = vpop.f32.mrb[12].mxu0 }
 0x283   : > { %1676 = vst [vmem:[%s2647_s15 + $0x50] sm:$0xff] %v1640_v11   ;;  %v973_v25 = vpop.f32.mrb[13].mxu0 }
 0x284   : > { %1320 = vst [vmem:[%s2643_s8 + $0xa8] sm:$0xff] %v1288_v5  ;;  %v1273_v10 = vadd.f32 %v2637_v28, %v973_v25  ;;  %v975_v31 = vpop.f32.mrb[14].mxu0 }
 0x285   : > { %v1605_v17 = vpack.c.bf16 %v975_v31, %v971_v2  ;;  %v977_v60 = vpop.f32.mrb[15].mxu0 }
 0x286   : > { %1305 = vst [vmem:[%s2643_s8 + $0x30] sm:$0xff] %v1273_v10  ;;  %v1274_v38 = vadd.f32 %v2637_v28, %v977_v60  ;;  %v1051_v3 = vpop.f32.mrb[12].mxu1 }
 0x287   : > { %1669 = vst [vmem:[%s2647_s15 + $0x18] sm:$0xff] %v1605_v17   ;;  %v1053_v53 = vpop.f32.mrb[13].mxu1 }
 0x288   : > { %1306 = vst [vmem:[%s2643_s8 + $0x38] sm:$0xff] %v1274_v38  ;;  %v1289_v4 = vadd.f32 %v2637_v28, %v1053_v53  ;;  %v1055_v6 = vpop.f32.mrb[14].mxu1 }
 0x289   : > { %v1645_v26 = vpack.c.bf16 %v1055_v6, %v1051_v3  ;;  %v1057_v58 = vpop.f32.mrb[15].mxu1 }
 0x28a   : > { %1321 = vst [vmem:[%s2643_s8 + $0xb0] sm:$0xff] %v1289_v4  ;;  %v1290_v14 = vadd.f32 %v2637_v28, %v1057_v58  ;;  %v981_v52 = vpop.f32.mrb[16].mxu0 }
 0x28b   : > { %1677 = vst [vmem:[%s2647_s15 + $0x58] sm:$0xff] %v1645_v26   ;;  %v983_v7 = vpop.f32.mrb[17].mxu0 }
 0x28c   : > { %1322 = vst [vmem:[%s2643_s8 + $0xb8] sm:$0xff] %v1290_v14  ;;  %v1275_v33 = vadd.f32 %v2637_v28, %v983_v7  ;;  %v985_v34 = vpop.f32.mrb[18].mxu0 }
 0x28d   : > { %v1610_v8 = vpack.c.bf16 %v985_v34, %v981_v52  ;;  %v987_v54 = vpop.f32.mrb[19].mxu0 }
 0x28e   : > { %1307 = vst [vmem:[%s2643_s8 + $0x40] sm:$0xff] %v1275_v33  ;;  %v1276_v35 = vadd.f32 %v2637_v28, %v987_v54  ;;  %v1061_v27 = vpop.f32.mrb[16].mxu1 }
 0x28f   : > { %1670 = vst [vmem:[%s2647_s15 + $0x20] sm:$0xff] %v1610_v8   ;;  %v1063_v19 = vpop.f32.mrb[17].mxu1 }
 0x290   : > { %1308 = vst [vmem:[%s2643_s8 + $0x48] sm:$0xff] %v1276_v35  ;;  %v1291_v37 = vadd.f32 %v2637_v28, %v1063_v19  ;;  %v1065_v36 = vpop.f32.mrb[18].mxu1 }
 0x291   : > { %v1650_v13 = vpack.c.bf16 %v1065_v36, %v1061_v27  ;;  %v1067_v24 = vpop.f32.mrb[19].mxu1 }
 0x292   : > { %1323 = vst [vmem:[%s2643_s8 + $0xc0] sm:$0xff] %v1291_v37  ;;  %v1292_v29 = vadd.f32 %v2637_v28, %v1067_v24  ;;  %v991_v40 = vpop.f32.mrb[20].mxu0 }
 0x293   : > { %1678 = vst [vmem:[%s2647_s15 + $0x60] sm:$0xff] %v1650_v13   ;;  %v993_v0 = vpop.f32.mrb[21].mxu0 }
 0x294   : > { %1324 = vst [vmem:[%s2643_s8 + $0xc8] sm:$0xff] %v1292_v29  ;;  %v1277_v61 = vadd.f32 %v2637_v28, %v993_v0  ;;  %v995_v41 = vpop.f32.mrb[22].mxu0 }
 0x295   : > { %v1615_v45 = vpack.c.bf16 %v995_v41, %v991_v40  ;;  %v997_v43 = vpop.f32.mrb[23].mxu0 }
 0x296   : > { %1309 = vst [vmem:[%s2643_s8 + $0x50] sm:$0xff] %v1277_v61  ;;  %v1278_v44 = vadd.f32 %v2637_v28, %v997_v43  ;;  %v1071_v32 = vpop.f32.mrb[20].mxu1 }
 0x297   : > { %1671 = vst [vmem:[%s2647_s15 + $0x28] sm:$0xff] %v1615_v45   ;;  %v1073_v47 = vpop.f32.mrb[21].mxu1 }
 0x298   : > { %1310 = vst [vmem:[%s2643_s8 + $0x58] sm:$0xff] %v1278_v44  ;;  %v1293_v48 = vadd.f32 %v2637_v28, %v1073_v47  ;;  %v1075_v39 = vpop.f32.mrb[22].mxu1 }
 0x299   : > { %v1655_v9 = vpack.c.bf16 %v1075_v39, %v1071_v32  ;;  %v1077_v21 = vpop.f32.mrb[23].mxu1 }
 0x29a   : > { %1325 = vst [vmem:[%s2643_s8 + $0xd0] sm:$0xff] %v1293_v48  ;;  %v1294_v49 = vadd.f32 %v2637_v28, %v1077_v21  ;;  %v1001_v18 = vpop.f32.mrb[24].mxu0 }
 0x29b   : > { %1679 = vst [vmem:[%s2647_s15 + $0x68] sm:$0xff] %v1655_v9   ;;  %v1003_v22 = vpop.f32.mrb[25].mxu0 }
 0x29c   : > { %1326 = vst [vmem:[%s2643_s8 + $0xd8] sm:$0xff] %v1294_v49  ;;  %v1279_v15 = vadd.f32 %v2637_v28, %v1003_v22  ;;  %v1005_v51 = vpop.f32.mrb[26].mxu0 }
 0x29d   : > { %v1620_v55 = vpack.c.bf16 %v1005_v51, %v1001_v18  ;;  %v1007_v56 = vpop.f32.mrb[27].mxu0 }
 0x29e   : > { %1311 = vst [vmem:[%s2643_s8 + $0x60] sm:$0xff] %v1279_v15  ;;  %v1280_v57 = vadd.f32 %v2637_v28, %v1007_v56  ;;  %v1081_v42 = vpop.f32.mrb[24].mxu1 }
 0x29f   : > { %1672 = vst [vmem:[%s2647_s15 + $0x30] sm:$0xff] %v1620_v55   ;;  %v1083_v62 = vpop.f32.mrb[25].mxu1 }
 0x2a0   : > { %1312 = vst [vmem:[%s2643_s8 + $0x68] sm:$0xff] %v1280_v57  ;;  %v1295_v50 = vadd.f32 %v2637_v28, %v1083_v62  ;;  %v1085_v12 = vpop.f32.mrb[26].mxu1 }
 0x2a1   : > { %v1660_v23 = vpack.c.bf16 %v1085_v12, %v1081_v42  ;;  %v1087_v16 = vpop.f32.mrb[27].mxu1 }
 0x2a2   : > { %1327 = vst [vmem:[%s2643_s8 + $0xe0] sm:$0xff] %v1295_v50  ;;  %v1296_v59 = vadd.f32 %v2637_v28, %v1087_v16  ;;  %v1011_v20 = vpop.f32.mrb[28].mxu0 }
 0x2a3   : > { %1680 = vst [vmem:[%s2647_s15 + $0x70] sm:$0xff] %v1660_v23   ;;  %v1013_v30 = vpop.f32.mrb[29].mxu0 }
 0x2a4   : > { %1328 = vst [vmem:[%s2643_s8 + $0xe8] sm:$0xff] %v1296_v59  ;;  %v1281_v63 = vadd.f32 %v2637_v28, %v1013_v30  ;;  %v1015_v46 = vpop.f32.mrb[30].mxu0 }
 0x2a5   : > { %v1625_v11 = vpack.c.bf16 %v1015_v46, %v1011_v20  ;;  %v1017_v1 = vpop.f32.mrb[31].mxu0 }
 0x2a6   : > { %1313 = vst [vmem:[%s2643_s8 + $0x70] sm:$0xff] %v1281_v63  ;;  %v1282_v5 = vadd.f32 %v2637_v28, %v1017_v1  ;;  %v1091_v2 = vpop.f32.mrb[28].mxu1 }
 0x2a7   : > { %1673 = vst [vmem:[%s2647_s15 + $0x38] sm:$0xff] %v1625_v11   ;;  %v1093_v25 = vpop.f32.mrb[29].mxu1 }
 0x2a8   : > { %1314 = vst [vmem:[%s2643_s8 + $0x78] sm:$0xff] %v1282_v5  ;;  %v1297_v10 = vadd.f32 %v2637_v28, %v1093_v25  ;;  %v1095_v31 = vpop.f32.mrb[30].mxu1 }
 0x2a9   : > { %v1665_v17 = vpack.c.bf16 %v1095_v31, %v1091_v2  ;;  %v1097_v60 = vpop.f32.mrb[31].mxu1 }
 0x2aa   : > { %1329 = vst [vmem:[%s2643_s8 + $0xf0] sm:$0xff] %v1297_v10  ;;  %v1298_v38 = vadd.f32 %v2637_v28, %v1097_v60 }
 0x2ab   : > { %1681 = vst [vmem:[%s2647_s15 + $0x78] sm:$0xff] %v1665_v17  }
 0x2ac   : > { %1330 = vst [vmem:[%s2643_s8 + $0xf8] sm:$0xff] %v1298_v38 }
 0x2ad   : > { %1926 = shalt.err (!%p1923_p7)
}
 0x2ae   : > { %s1927_s8 = scalar_lea.hbm %s2722_s11, 2048  ;;  %s1931_s27 = scalar_lea.hbm %s2815_s5, 4096 }
 0x2af   : > { %p1928_p9 = scmp.ne.s32.totalorder %s2722_s11, %s1927_s8  ;;  %p1932_p5 = scmp.lt.u32.totalorder %s2722_s11, %s2815_s5 }
 0x2b0   : > { %p1933_p11 = scmp.lt.u32.totalorder %s1931_s27, %s1927_s8  ;;  %p1935_p4 = scmp.lt.u32.totalorder %s1927_s8, %s2722_s11 }
 0x2b1   : > { %p1929_p1 = pnand %p1928_p9, %p2157_p12 }
 0x2b2   : > { %p1934_p2 = por %p1933_p11, %p1932_p5 }
 0x2b3   : > { %p1930_p0 = pneg %p1929_p1 }
 0x2b4   : > { %p1936_p6 = por %p1935_p4, %p1934_p2 }
 0x2b6   : > { %p1937_p8 = pnand %p1936_p6, %p1930_p0 }
 0x2b8   : > { %1940 = shalt.err (!%p1937_p8)
}
 0x2b9   : > { %s2023_s10 = smov 64   ;;  %s2024_s30 = smov 4  }
 0x2ba   : > { %1704 = dma.vmem_to_hbm [thread:$0]  (%p2157_p12), %s2729_s18, 2048, %s2722_s11, %s1332_s19, %s2023_s10, %s2023_s10, %s2024_s30  }
 0x2bb   : > { %s1337_s16 = scalar_lea.sflag [#allocation9], %s2208_s12  ;;  %s1941_s17 = scalar_lea.vmem %s2738_s29, 4096 }
 0x2bc   : > { %p1942_p10 = scmp.ne.s32.totalorder %s2738_s29, %s1941_s17  ;;  %s2025_s8 = smov [#allocation8]  }
 0x2bd   : > { %s1945_s15 = sshll.u32 %s2025_s8, 4  ;;  %s1946_s15 = int_to_ptr.vmem [resolvable:$false] %s1945_s15 }
 0x2be   : > { %p1943_p13 = pnand %p1942_p10, %p2157_p12  ;;  %s1947_s7 = scalar_lea.vmem %s1946_s15, 8192 }
 0x2bf   : > { %p1948_p7 = scmp.lt.s32.totalorder %s2738_s29, %s1946_s15  ;;  %p1949_p9 = scmp.lt.s32.totalorder %s1947_s7, %s1941_s17 }
 0x2c0   : > { %p1944_p3 = pneg %p1943_p13 }
 0x2c1   : > { %p1950_p1 = por %p1949_p9, %p1948_p7 }
 0x2c3   : > { %p1951_p0 = pnand %p1950_p1, %p1944_p3 }
 0x2c5   : > { %1954 = shalt.err (!%p1951_p0)
}
 0x2c6   : > { %s1955_s18 = scalar_lea.hbm %s2736_s25, 4096  ;;  %s1959_s27 = scalar_lea.hbm %s2816_s6, 8192 }
 0x2c7   : > { %p1956_p5 = scmp.ne.s32.totalorder %s2736_s25, %s1955_s18  ;;  %p1960_p4 = scmp.lt.u32.totalorder %s2736_s25, %s2816_s6 }
 0x2c8   : > { %p1961_p6 = scmp.lt.u32.totalorder %s1959_s27, %s1955_s18  ;;  %p1963_p10 = scmp.lt.u32.totalorder %s1955_s18, %s2736_s25 }
 0x2c9   : > { %p1957_p11 = pnand %p1956_p5, %p2157_p12 }
 0x2ca   : > { %p1962_p8 = por %p1961_p6, %p1960_p4 }
 0x2cb   : > { %p1958_p2 = pneg %p1957_p11 }
 0x2cc   : > { %p1964_p13 = por %p1963_p10, %p1962_p8 }
 0x2ce   : > { %p1965_p3 = pnand %p1964_p13, %p1958_p2 }
 0x2d0   : > { %1968 = shalt.err (!%p1965_p3)
}
 0x2d1   : > { %s2026_s10 = smov 128   ;;  %s2027_s30 = smov 8  }
 0x2d2   : > { %1705 = dma.vmem_to_hbm [thread:$0]  (%p2157_p12), %s2738_s29, 4096, %s2736_s25, %s1337_s16, %s2026_s10, %s2026_s10, %s2027_s30  }
 0x2d3 PF: > { %s1381_s17 = sand.u32 1, %s2003_s21   ;;  %p2831_p7 = scmp.ne.s32.totalorder %s2821_s28, 0 }
 0x2d4   : > { %p2832_p9 = scmp.ge.s32.totalorder %s2015_s24, 2  ;;  %s1382_s8 = scalar_lea.sflag [#allocation4], %s1381_s17 }
 0x2d6   : > { %p1717_p1 = pnand %p2832_p9, %p2831_p7 }
 0x2d8   : > { %1994 = dma.done.wait (!%p1717_p1), %s1382_s8, 2048  }
 0x2d9   : > { %1996 = vsyncadd (!%p1717_p1), %s1382_s8, 4294965248  ;;  %s1391_s15 = scalar_lea.sflag [#allocation9], %s1381_s17 }
 0x2da   : > { %1998 = dma.done.wait (!%p1717_p1), %s1391_s15, 4096  }
 0x2db   : > { %2000 = vsyncadd (!%p1717_p1), %s1391_s15, 4294963200  ;;  %p24_p12 = scmp.ge.s32.totalorder %s2119_s9, 4   ;;  %s2833_s21 = smov %s2007_s22 }
 0x2dc   : > { %s2834_s22 = smov %s2011_s23  ;;  %s2835_s23 = smov %s2153_s13 }
 0x2dd   : > { %s2836_s24 = smov %s2119_s9  ;;  %26 = sbr.rel (!%p24_p12) target bundleno = 8 (0x8), region = 106 }
 0x2e4   :  { %1396 = vsyncpa [#allocation3], 1 }
 0x2e5   :  { %1398 = vsyncpa [#allocation3 + $0x1], 1 }
 0x2e6   :  { %1399 = vsyncpa [#allocation6], 1 }
 0x2e7   :  { %1400 = vsyncpa [#allocation4], 1 }
 0x2e8   :  { %1402 = vsyncpa [#allocation4 + $0x1], 1 }
 0x2e9   :  { %1403 = vsyncpa [#allocation9], 1 }
 0x2ea   :  { %1405 = vsyncpa [#allocation9 + $0x1], 1 }

</bundles_post_ra>
